<compile_context>
chip_gen: v6e
topology: v6e:2x2x1
jax: 0.10.0
libtpu: 0.0.40
codegen_flags: <defaults>
</compile_context>

<pallas_src>
import functools

import jax
import jax.numpy as jnp
from jax.experimental import pallas as pl
from jax.experimental.pallas import tpu as pltpu


def _bottleneck_kernel(x_ref, w1_ref, b1_ref, w2_ref, b2_ref, w3_ref, b3_ref,
                       o_ref, *, TB, H, W, C1, C2, no_relu, fold_w):
    """TB batch elements per grid step; all operands resident in VMEM."""
    M = TB * H * W

    # ---- conv1 (1x1, BN scale folded into w1) + bias + relu -----------------
    x2d = x_ref[...].reshape(M, C1)                            # bf16 (M, C1)
    out1 = jnp.dot(x2d, w1_ref[...], preferred_element_type=jnp.float32)
    out1 = jnp.maximum(out1 + b1_ref[...], 0.0)                # f32 epilogue
    # Cast to bf16 *before* building the 9 taps: halves the im2col traffic.
    out1 = out1.astype(jnp.bfloat16).reshape(TB, H, W, C2)

    # ---- conv2 (3x3, stride 1, pad 1) as ONE wide-K MXU matmul --------------
    # Nine shifted views of out1 (zero padding at borders), built in bf16:
    #   H shifts: major-dim slices + a zero row (cheap vreg placement).
    #   W shifts: sublane-dim slices + a zero column.
    # Concatenated along the reduction axis -> (M, 9*C2); w2 was reshaped
    # host-side to (9*C2, C2) in matching (dh, dw, cin) row order.
    zero_row = jnp.zeros((TB, 1, W, C2), jnp.bfloat16)
    zero_col = jnp.zeros((TB, H, 1, C2), jnp.bfloat16)
    taps = []
    for dh in (-1, 0, 1):                                      # statically unrolled
        if dh == -1:                    # tap[h] = out1[h-1]
            xh = jnp.concatenate([zero_row, out1[:, :H - 1]], axis=1)
        elif dh == 1:                   # tap[h] = out1[h+1]
            xh = jnp.concatenate([out1[:, 1:], zero_row], axis=1)
        else:
            xh = out1
        for dw in (-1, 0, 1):
            if dw == -1:                # tap[:, w] = xh[:, w-1]
                xs = jnp.concatenate([zero_col, xh[:, :, :W - 1, :]], axis=2)
            elif dw == 1:               # tap[:, w] = xh[:, w+1]
                xs = jnp.concatenate([xh[:, :, 1:, :], zero_col], axis=2)
            else:
                xs = xh
            taps.append(xs)
    patches = jnp.concatenate(taps, axis=-1).reshape(M, 9 * C2)   # bf16

    out2 = jnp.dot(patches, w2_ref[...], preferred_element_type=jnp.float32)
    out2 = jnp.maximum(out2 + b2_ref[...], 0.0)                # f32 (M, C2)

    # ---- conv3 (1x1, BN scale folded) + bias ---------------------------------
    out3 = jnp.dot(out2.astype(jnp.bfloat16), w3_ref[...],
                   preferred_element_type=jnp.float32)
    out3 = out3 + b3_ref[...]                                  # f32 (M, C1)

    # ---- residual add (re-read x, upcast) + relu unless no_relu --------------
    identity = x_ref[...].reshape(M, C1).astype(jnp.float32)
    out = out3 + identity                                      # C1 == 2*C2
    if not no_relu:
        out = jnp.maximum(out, 0.0)
    out = out.astype(o_ref.dtype)

    # ---- store ----------------------------------------------------------------
    if fold_w:
        # Lane-dense store: pack the W axis into lanes so the output block's
        # last dim is W*C1 (a multiple of 128) and every vst is unmasked.
        out4 = out.reshape(TB, H, W, C1)
        o_ref[...] = jnp.concatenate([out4[:, :, w, :] for w in range(W)],
                                     axis=-1)                   # (TB, H, W*C1)
    else:
        o_ref[...] = out.reshape(TB, H, W, C1)


def _full_spec(shape):
    zeros = (0,) * len(shape)
    return pl.BlockSpec(shape, lambda n, _z=zeros: _z)


def _estimate_vmem_bytes(TB, H, W, C1, C2, fold_w):
    """Rough per-step VMEM footprint (lane/sublane-padded), with headroom."""
    LANE, SUB = 128, 8

    def tile(rows, cols, itemsize):
        return (-(-rows // SUB) * SUB) * (-(-cols // LANE) * LANE) * itemsize

    M = TB * H * W
    x_blk = tile(M, C1, 2)                                     # bf16 x block
    o_blk = tile(TB * H, W * C1, 4) if fold_w else tile(M, C1, 4)
    weights = (tile(C1, C2, 2) + tile(9 * C2, C2, 2) + tile(C2, C1, 2)
               + 2 * tile(1, C2, 4) + tile(1, C1, 4))
    inter = (tile(M, C2, 2)            # out1 (bf16)
             + 9 * tile(M, C2, 2)      # shifted taps (bf16)
             + tile(M, 9 * C2, 2)      # concatenated patches (bf16)
             + tile(M, C2, 4)          # out2 (f32)
             + 2 * tile(M, C1, 4))     # out3 + residual (f32)
    total = 2 * (x_blk + o_blk + weights) + inter              # I/O double-buffered
    total = int(total * 1.5) + (4 << 20)                       # relayout headroom
    return int(min(max(total, 32 << 20), 56 << 20))            # stay < v7x physical


def bottleneck_forward(x, params, *, no_relu=False, batch_block=1):
    """x: (N, H, W, C1) float32, NHWC."""
    N, H, W, C1 = x.shape
    C2 = params["w1"].shape[1]
    assert C1 == 2 * C2, "identity add (downsample=None) requires c1 == 2*c2"
    TB = batch_block
    assert N % TB == 0, "batch_block must divide N"

    # Lane-dense output presentation (N, H, W*C1) only pays when channels are
    # narrower than a lane row but W*C1 tiles lanes exactly.
    fold_w = (C1 % 128 != 0) and ((W * C1) % 128 == 0)

    # Fold BN scales into the conv weights (host-side, one-time) and cast the
    # matmul operands to bf16 for the MXU.  Biases stay f32 for the epilogue.
    w1 = (params["w1"] * params["s1"]).astype(jnp.bfloat16)                 # (C1, C2)
    w2 = (params["w2"] * params["s2"]).reshape(9 * C2, C2).astype(jnp.bfloat16)
    w3 = (params["w3"] * params["s3"]).astype(jnp.bfloat16)                 # (C2, C1)
    b1, b2, b3 = params["b1"], params["b2"], params["b3"]

    xb = x.astype(jnp.bfloat16)                                # halve activation DMA

    kernel = functools.partial(_bottleneck_kernel, TB=TB, H=H, W=W, C1=C1,
                               C2=C2, no_relu=no_relu, fold_w=fold_w)

    if fold_w:
        out_shape = jax.ShapeDtypeStruct((N, H, W * C1), x.dtype)
        out_spec = pl.BlockSpec((TB, H, W * C1), lambda n: (n, 0, 0))
    else:
        out_shape = jax.ShapeDtypeStruct((N, H, W, C1), x.dtype)
        out_spec = pl.BlockSpec((TB, H, W, C1), lambda n: (n, 0, 0, 0))

    out = pl.pallas_call(
        kernel,
        out_shape=out_shape,
        grid=(N // TB,),
        in_specs=[
            pl.BlockSpec((TB, H, W, C1), lambda n: (n, 0, 0, 0)),  # x (bf16)
            _full_spec((C1, C2)),            # w1 (scale folded, bf16)
            _full_spec((1, C2)),             # bn1 bias (f32)
            _full_spec((9 * C2, C2)),        # w2 (im2col layout, bf16)
            _full_spec((1, C2)),             # bn2 bias (f32)
            _full_spec((C2, 2 * C2)),        # w3 (scale folded, bf16)
            _full_spec((1, 2 * C2)),         # bn3 bias (f32)
        ],
        out_specs=out_spec,
        compiler_params=pltpu.CompilerParams(
            dimension_semantics=("parallel",),
            vmem_limit_bytes=_estimate_vmem_bytes(TB, H, W, C1, C2, fold_w)),
    )(xb, w1, b1, w2, b2, w3, b3)

    return out.reshape(N, H, W, C1) if fold_w else out


# ----------------------- deterministic parameter init -----------------------
def make_params(key, c1, c2, eps=1e-5):
    ks = jax.random.split(key, 12)

    def bn_fold(kg, kb, km, kv, c):
        gamma = 1.0 + 0.1 * jax.random.normal(kg, (c,), jnp.float32)
        beta = 0.1 * jax.random.normal(kb, (c,), jnp.float32)
        mean = 0.1 * jax.random.normal(km, (c,), jnp.float32)
        var = 0.5 + jax.random.uniform(kv, (c,), jnp.float32)
        scale = gamma / jnp.sqrt(var + eps)
        bias = beta - mean * scale
        return scale.reshape(1, c), bias.reshape(1, c)

    w1 = 0.1 * jax.random.normal(ks[0], (c1, c2), jnp.float32)
    w2 = 0.1 * jax.random.normal(ks[1], (3, 3, c2, c2), jnp.float32)
    w3 = 0.1 * jax.random.normal(ks[2], (c2, 2 * c2), jnp.float32)
    s1, b1 = bn_fold(ks[3], ks[4], ks[5], ks[6], c2)
    s2, b2 = bn_fold(ks[7], ks[8], ks[9], ks[10], c2)
    s3, b3 = bn_fold(*jax.random.split(ks[11], 4), 2 * c2)
    return dict(w1=w1, s1=s1, b1=b1, w2=w2, s2=s2, b2=b2,
                w3=w3, s3=s3, b3=b3)


# ----------------------- pure-JAX f32 reference (for checking) --------------
def bottleneck_reference(x, p, *, no_relu=False):
    N, H, W, C1 = x.shape

    def bn(h, s, b):
        return h * s.reshape(1, 1, 1, -1) + b.reshape(1, 1, 1, -1)

    out = jax.nn.relu(bn(jnp.einsum("nhwc,cd->nhwd", x, p["w1"]),
                         p["s1"], p["b1"]))
    out_p = jnp.pad(out, ((0, 0), (1, 1), (1, 1), (0, 0)))
    acc = jnp.zeros_like(out)
    for dh in range(3):
        for dw in range(3):
            acc = acc + jnp.einsum("nhwc,cd->nhwd",
                                   out_p[:, dh:dh + H, dw:dw + W, :],
                                   p["w2"][dh, dw])
    out = jax.nn.relu(bn(acc, p["s2"], p["b2"]))
    out = bn(jnp.einsum("nhwc,cd->nhwd", out, p["w3"]), p["s3"], p["b3"])
    out = out + x
    return out if no_relu else jax.nn.relu(out)


if __name__ == "__main__":
    # Small shapes: N=2, c1=8, c2=4 (expansion 2 -> output channels = 8), 16x16.
    # NOTE: production widths should be multiples of 128 for real MXU/lane
    # utilization; this config only checks correctness of the kernel path.
    N, H, W = 2, 16, 16
    c1, c2 = 8, 4

    key = jax.random.PRNGKey(0)
    kx, kp = jax.random.split(key)
    x = jax.random.normal(kx, (N, H, W, c1), jnp.float32)   # NHWC
    params = make_params(kp, c1, c2)

    # batch_block=1 keeps the parallel grid extent at 2 (both v7x TCs busy).
    out = bottleneck_forward(x, params, no_relu=False, batch_block=1)
    out = jax.block_until_ready(out)

    ref = jax.block_until_ready(bottleneck_reference(x, params, no_relu=False))
    assert out.shape == (N, H, W, c1)
    # Kernel uses bf16 MXU operands, a bf16 input (incl. the residual read) and
    # f32 accumulation; reference is pure f32, so allow a bf16-sized tolerance.
    assert jnp.allclose(out, ref, rtol=3e-2, atol=3e-2), "mismatch vs reference"

    print("KERNEL_OK")
</pallas_src>

<mosaic_0001>
module attributes {stable_mosaic.version = 11 : i64} {
  func.func @_bottleneck_kernel(%arg0: i32, %arg1: memref<1x16x16x8xbf16, #tpu.memory_space<vmem>>, %arg2: memref<8x4xbf16, #tpu.memory_space<vmem>>, %arg3: memref<1x4xf32, #tpu.memory_space<vmem>>, %arg4: memref<36x4xbf16, #tpu.memory_space<vmem>>, %arg5: memref<1x4xf32, #tpu.memory_space<vmem>>, %arg6: memref<4x8xbf16, #tpu.memory_space<vmem>>, %arg7: memref<1x8xf32, #tpu.memory_space<vmem>>, %arg8: memref<1x16x128xf32, #tpu.memory_space<vmem>>) attributes {dimension_semantics = [#tpu.dimension_semantics<parallel>], iteration_bounds = array<i64: 2>, scalar_prefetch = 0 : i64, scratch_operands = 0 : i64, tpu.core_type = #tpu.core_type<tc>, window_params = [{transform_indices = @transform_0, window_bounds = array<i64: 1, 16, 16, 8>}, {pipeline_mode = #tpu.pipeline_mode<synchronous>, transform_indices = @transform_1, window_bounds = array<i64: 8, 4>}, {pipeline_mode = #tpu.pipeline_mode<synchronous>, transform_indices = @transform_2, window_bounds = array<i64: 1, 4>}, {pipeline_mode = #tpu.pipeline_mode<synchronous>, transform_indices = @transform_3, window_bounds = array<i64: 36, 4>}, {pipeline_mode = #tpu.pipeline_mode<synchronous>, transform_indices = @transform_4, window_bounds = array<i64: 1, 4>}, {pipeline_mode = #tpu.pipeline_mode<synchronous>, transform_indices = @transform_5, window_bounds = array<i64: 4, 8>}, {pipeline_mode = #tpu.pipeline_mode<synchronous>, transform_indices = @transform_6, window_bounds = array<i64: 1, 8>}, {transform_indices = @transform_7, window_bounds = array<i64: 1, 16, 128>}]} {
    %c0 = arith.constant 0 : index
    %c0_0 = arith.constant 0 : index
    %c0_1 = arith.constant 0 : index
    %c0_2 = arith.constant 0 : index
    %0 = vector.load %arg1[%c0, %c0_0, %c0_1, %c0_2] : memref<1x16x16x8xbf16, #tpu.memory_space<vmem>>, vector<1x16x16x8xbf16>
    %1 = vector.shape_cast %0 : vector<1x16x16x8xbf16> to vector<256x8xbf16>
    %c0_3 = arith.constant 0 : index
    %c0_4 = arith.constant 0 : index
    %2 = vector.load %arg2[%c0_3, %c0_4] : memref<8x4xbf16, #tpu.memory_space<vmem>>, vector<8x4xbf16>
    %cst = arith.constant dense<0.000000e+00> : vector<256x4xf32>
    %3 = tpu.matmul %1, %2, %cst {dimension_numbers = #tpu.dot_dimension_numbers<[1], [0], [0], [1], [0, 0, 1, 1], [], []>} : vector<256x8xbf16>, vector<8x4xbf16>, vector<256x4xf32> -> vector<256x4xf32>
    %c0_5 = arith.constant 0 : index
    %c0_6 = arith.constant 0 : index
    %4 = vector.load %arg3[%c0_5, %c0_6] : memref<1x4xf32, #tpu.memory_space<vmem>>, vector<1x4xf32>
    %5 = vector.broadcast %4 : vector<1x4xf32> to vector<256x4xf32>
    %6 = arith.addf %3, %5 : vector<256x4xf32>
    %cst_7 = arith.constant 0.000000e+00 : f32
    %7 = vector.broadcast %cst_7 : f32 to vector<256x4xf32>
    %8 = arith.maximumf %6, %7 : vector<256x4xf32>
    %9 = arith.truncf %8 : vector<256x4xf32> to vector<256x4xbf16>
    %10 = vector.shape_cast %9 : vector<256x4xbf16> to vector<1x16x16x4xbf16>
    %cst_8 = arith.constant 0.000000e+00 : bf16
    %11 = vector.broadcast %cst_8 : bf16 to vector<1x1x16x4xbf16>
    %cst_9 = arith.constant 0.000000e+00 : bf16
    %12 = vector.broadcast %cst_9 : bf16 to vector<1x16x1x4xbf16>
    %13 = vector.extract_strided_slice %10 {offsets = [0, 0, 0, 0], sizes = [1, 15, 16, 4], strides = [1, 1, 1, 1]} : vector<1x16x16x4xbf16> to vector<1x15x16x4xbf16>
    %14 = tpu.concatenate %11, %13 in 1 : vector<1x1x16x4xbf16>, vector<1x15x16x4xbf16> -> vector<1x16x16x4xbf16>
    %15 = vector.extract_strided_slice %14 {offsets = [0, 0, 0, 0], sizes = [1, 16, 15, 4], strides = [1, 1, 1, 1]} : vector<1x16x16x4xbf16> to vector<1x16x15x4xbf16>
    %16 = tpu.concatenate %12, %15 in 2 : vector<1x16x1x4xbf16>, vector<1x16x15x4xbf16> -> vector<1x16x16x4xbf16>
    %17 = vector.extract_strided_slice %14 {offsets = [0, 0, 1, 0], sizes = [1, 16, 15, 4], strides = [1, 1, 1, 1]} : vector<1x16x16x4xbf16> to vector<1x16x15x4xbf16>
    %18 = tpu.concatenate %17, %12 in 2 : vector<1x16x15x4xbf16>, vector<1x16x1x4xbf16> -> vector<1x16x16x4xbf16>
    %19 = vector.extract_strided_slice %10 {offsets = [0, 0, 0, 0], sizes = [1, 16, 15, 4], strides = [1, 1, 1, 1]} : vector<1x16x16x4xbf16> to vector<1x16x15x4xbf16>
    %20 = tpu.concatenate %12, %19 in 2 : vector<1x16x1x4xbf16>, vector<1x16x15x4xbf16> -> vector<1x16x16x4xbf16>
    %21 = vector.extract_strided_slice %10 {offsets = [0, 0, 1, 0], sizes = [1, 16, 15, 4], strides = [1, 1, 1, 1]} : vector<1x16x16x4xbf16> to vector<1x16x15x4xbf16>
    %22 = tpu.concatenate %21, %12 in 2 : vector<1x16x15x4xbf16>, vector<1x16x1x4xbf16> -> vector<1x16x16x4xbf16>
    %23 = vector.extract_strided_slice %10 {offsets = [0, 1, 0, 0], sizes = [1, 15, 16, 4], strides = [1, 1, 1, 1]} : vector<1x16x16x4xbf16> to vector<1x15x16x4xbf16>
    %24 = tpu.concatenate %23, %11 in 1 : vector<1x15x16x4xbf16>, vector<1x1x16x4xbf16> -> vector<1x16x16x4xbf16>
    %25 = vector.extract_strided_slice %24 {offsets = [0, 0, 0, 0], sizes = [1, 16, 15, 4], strides = [1, 1, 1, 1]} : vector<1x16x16x4xbf16> to vector<1x16x15x4xbf16>
    %26 = tpu.concatenate %12, %25 in 2 : vector<1x16x1x4xbf16>, vector<1x16x15x4xbf16> -> vector<1x16x16x4xbf16>
    %27 = vector.extract_strided_slice %24 {offsets = [0, 0, 1, 0], sizes = [1, 16, 15, 4], strides = [1, 1, 1, 1]} : vector<1x16x16x4xbf16> to vector<1x16x15x4xbf16>
    %28 = tpu.concatenate %27, %12 in 2 : vector<1x16x15x4xbf16>, vector<1x16x1x4xbf16> -> vector<1x16x16x4xbf16>
    %29 = tpu.concatenate %16, %14, %18, %20, %10, %22, %26, %24, %28 in 3 : vector<1x16x16x4xbf16>, vector<1x16x16x4xbf16>, vector<1x16x16x4xbf16>, vector<1x16x16x4xbf16>, vector<1x16x16x4xbf16>, vector<1x16x16x4xbf16>, vector<1x16x16x4xbf16>, vector<1x16x16x4xbf16>, vector<1x16x16x4xbf16> -> vector<1x16x16x36xbf16>
    %30 = vector.shape_cast %29 : vector<1x16x16x36xbf16> to vector<256x36xbf16>
    %c0_10 = arith.constant 0 : index
    %c0_11 = arith.constant 0 : index
    %31 = vector.load %arg4[%c0_10, %c0_11] : memref<36x4xbf16, #tpu.memory_space<vmem>>, vector<36x4xbf16>
    %cst_12 = arith.constant dense<0.000000e+00> : vector<256x4xf32>
    %32 = tpu.matmul %30, %31, %cst_12 {dimension_numbers = #tpu.dot_dimension_numbers<[1], [0], [0], [1], [0, 0, 1, 1], [], []>} : vector<256x36xbf16>, vector<36x4xbf16>, vector<256x4xf32> -> vector<256x4xf32>
    %c0_13 = arith.constant 0 : index
    %c0_14 = arith.constant 0 : index
    %33 = vector.load %arg5[%c0_13, %c0_14] : memref<1x4xf32, #tpu.memory_space<vmem>>, vector<1x4xf32>
    %34 = vector.broadcast %33 : vector<1x4xf32> to vector<256x4xf32>
    %35 = arith.addf %32, %34 : vector<256x4xf32>
    %cst_15 = arith.constant 0.000000e+00 : f32
    %36 = vector.broadcast %cst_15 : f32 to vector<256x4xf32>
    %37 = arith.maximumf %35, %36 : vector<256x4xf32>
    %38 = arith.truncf %37 : vector<256x4xf32> to vector<256x4xbf16>
    %c0_16 = arith.constant 0 : index
    %c0_17 = arith.constant 0 : index
    %39 = vector.load %arg6[%c0_16, %c0_17] : memref<4x8xbf16, #tpu.memory_space<vmem>>, vector<4x8xbf16>
    %cst_18 = arith.constant dense<0.000000e+00> : vector<256x8xf32>
    %40 = tpu.matmul %38, %39, %cst_18 {dimension_numbers = #tpu.dot_dimension_numbers<[1], [0], [0], [1], [0, 0, 1, 1], [], []>} : vector<256x4xbf16>, vector<4x8xbf16>, vector<256x8xf32> -> vector<256x8xf32>
    %c0_19 = arith.constant 0 : index
    %c0_20 = arith.constant 0 : index
    %41 = vector.load %arg7[%c0_19, %c0_20] : memref<1x8xf32, #tpu.memory_space<vmem>>, vector<1x8xf32>
    %42 = vector.broadcast %41 : vector<1x8xf32> to vector<256x8xf32>
    %43 = arith.addf %40, %42 : vector<256x8xf32>
    %c0_21 = arith.constant 0 : index
    %c0_22 = arith.constant 0 : index
    %c0_23 = arith.constant 0 : index
    %c0_24 = arith.constant 0 : index
    %44 = vector.load %arg1[%c0_21, %c0_22, %c0_23, %c0_24] : memref<1x16x16x8xbf16, #tpu.memory_space<vmem>>, vector<1x16x16x8xbf16>
    %45 = vector.shape_cast %44 : vector<1x16x16x8xbf16> to vector<256x8xbf16>
    %46 = arith.extf %45 : vector<256x8xbf16> to vector<256x8xf32>
    %47 = arith.addf %43, %46 : vector<256x8xf32>
    %cst_25 = arith.constant 0.000000e+00 : f32
    %48 = vector.broadcast %cst_25 : f32 to vector<256x8xf32>
    %49 = arith.maximumf %47, %48 : vector<256x8xf32>
    %50 = vector.shape_cast %49 : vector<256x8xf32> to vector<1x16x16x8xf32>
    %51 = vector.extract_strided_slice %50 {offsets = [0, 0, 0, 0], sizes = [1, 16, 1, 8], strides = [1, 1, 1, 1]} : vector<1x16x16x8xf32> to vector<1x16x1x8xf32>
    %52 = vector.shape_cast %51 : vector<1x16x1x8xf32> to vector<1x16x8xf32>
    %53 = vector.extract_strided_slice %50 {offsets = [0, 0, 1, 0], sizes = [1, 16, 1, 8], strides = [1, 1, 1, 1]} : vector<1x16x16x8xf32> to vector<1x16x1x8xf32>
    %54 = vector.shape_cast %53 : vector<1x16x1x8xf32> to vector<1x16x8xf32>
    %55 = vector.extract_strided_slice %50 {offsets = [0, 0, 2, 0], sizes = [1, 16, 1, 8], strides = [1, 1, 1, 1]} : vector<1x16x16x8xf32> to vector<1x16x1x8xf32>
    %56 = vector.shape_cast %55 : vector<1x16x1x8xf32> to vector<1x16x8xf32>
    %57 = vector.extract_strided_slice %50 {offsets = [0, 0, 3, 0], sizes = [1, 16, 1, 8], strides = [1, 1, 1, 1]} : vector<1x16x16x8xf32> to vector<1x16x1x8xf32>
    %58 = vector.shape_cast %57 : vector<1x16x1x8xf32> to vector<1x16x8xf32>
    %59 = vector.extract_strided_slice %50 {offsets = [0, 0, 4, 0], sizes = [1, 16, 1, 8], strides = [1, 1, 1, 1]} : vector<1x16x16x8xf32> to vector<1x16x1x8xf32>
    %60 = vector.shape_cast %59 : vector<1x16x1x8xf32> to vector<1x16x8xf32>
    %61 = vector.extract_strided_slice %50 {offsets = [0, 0, 5, 0], sizes = [1, 16, 1, 8], strides = [1, 1, 1, 1]} : vector<1x16x16x8xf32> to vector<1x16x1x8xf32>
    %62 = vector.shape_cast %61 : vector<1x16x1x8xf32> to vector<1x16x8xf32>
    %63 = vector.extract_strided_slice %50 {offsets = [0, 0, 6, 0], sizes = [1, 16, 1, 8], strides = [1, 1, 1, 1]} : vector<1x16x16x8xf32> to vector<1x16x1x8xf32>
    %64 = vector.shape_cast %63 : vector<1x16x1x8xf32> to vector<1x16x8xf32>
    %65 = vector.extract_strided_slice %50 {offsets = [0, 0, 7, 0], sizes = [1, 16, 1, 8], strides = [1, 1, 1, 1]} : vector<1x16x16x8xf32> to vector<1x16x1x8xf32>
    %66 = vector.shape_cast %65 : vector<1x16x1x8xf32> to vector<1x16x8xf32>
    %67 = vector.extract_strided_slice %50 {offsets = [0, 0, 8, 0], sizes = [1, 16, 1, 8], strides = [1, 1, 1, 1]} : vector<1x16x16x8xf32> to vector<1x16x1x8xf32>
    %68 = vector.shape_cast %67 : vector<1x16x1x8xf32> to vector<1x16x8xf32>
    %69 = vector.extract_strided_slice %50 {offsets = [0, 0, 9, 0], sizes = [1, 16, 1, 8], strides = [1, 1, 1, 1]} : vector<1x16x16x8xf32> to vector<1x16x1x8xf32>
    %70 = vector.shape_cast %69 : vector<1x16x1x8xf32> to vector<1x16x8xf32>
    %71 = vector.extract_strided_slice %50 {offsets = [0, 0, 10, 0], sizes = [1, 16, 1, 8], strides = [1, 1, 1, 1]} : vector<1x16x16x8xf32> to vector<1x16x1x8xf32>
    %72 = vector.shape_cast %71 : vector<1x16x1x8xf32> to vector<1x16x8xf32>
    %73 = vector.extract_strided_slice %50 {offsets = [0, 0, 11, 0], sizes = [1, 16, 1, 8], strides = [1, 1, 1, 1]} : vector<1x16x16x8xf32> to vector<1x16x1x8xf32>
    %74 = vector.shape_cast %73 : vector<1x16x1x8xf32> to vector<1x16x8xf32>
    %75 = vector.extract_strided_slice %50 {offsets = [0, 0, 12, 0], sizes = [1, 16, 1, 8], strides = [1, 1, 1, 1]} : vector<1x16x16x8xf32> to vector<1x16x1x8xf32>
    %76 = vector.shape_cast %75 : vector<1x16x1x8xf32> to vector<1x16x8xf32>
    %77 = vector.extract_strided_slice %50 {offsets = [0, 0, 13, 0], sizes = [1, 16, 1, 8], strides = [1, 1, 1, 1]} : vector<1x16x16x8xf32> to vector<1x16x1x8xf32>
    %78 = vector.shape_cast %77 : vector<1x16x1x8xf32> to vector<1x16x8xf32>
    %79 = vector.extract_strided_slice %50 {offsets = [0, 0, 14, 0], sizes = [1, 16, 1, 8], strides = [1, 1, 1, 1]} : vector<1x16x16x8xf32> to vector<1x16x1x8xf32>
    %80 = vector.shape_cast %79 : vector<1x16x1x8xf32> to vector<1x16x8xf32>
    %81 = vector.extract_strided_slice %50 {offsets = [0, 0, 15, 0], sizes = [1, 16, 1, 8], strides = [1, 1, 1, 1]} : vector<1x16x16x8xf32> to vector<1x16x1x8xf32>
    %82 = vector.shape_cast %81 : vector<1x16x1x8xf32> to vector<1x16x8xf32>
    %83 = tpu.concatenate %52, %54, %56, %58, %60, %62, %64, %66, %68, %70, %72, %74, %76, %78, %80, %82 in 2 : vector<1x16x8xf32>, vector<1x16x8xf32>, vector<1x16x8xf32>, vector<1x16x8xf32>, vector<1x16x8xf32>, vector<1x16x8xf32>, vector<1x16x8xf32>, vector<1x16x8xf32>, vector<1x16x8xf32>, vector<1x16x8xf32>, vector<1x16x8xf32>, vector<1x16x8xf32>, vector<1x16x8xf32>, vector<1x16x8xf32>, vector<1x16x8xf32>, vector<1x16x8xf32> -> vector<1x16x128xf32>
    %c0_26 = arith.constant 0 : index
    %c0_27 = arith.constant 0 : index
    %c0_28 = arith.constant 0 : index
    %84 = vector.load %arg8[%c0_26, %c0_27, %c0_28] : memref<1x16x128xf32, #tpu.memory_space<vmem>>, vector<1x16x128xf32>
    tpu.vector_store %arg8[%c0_26, %c0_27, %c0_28], %83 {strides = array<i32>} : memref<1x16x128xf32, #tpu.memory_space<vmem>>, vector<1x16x128xf32>,
    return
  }
  func.func @transform_0(%arg0: i32) -> (i32, i32, i32, i32) {
    %c0_i32 = arith.constant 0 : i32
    %c0_i32_0 = arith.constant 0 : i32
    %c0_i32_1 = arith.constant 0 : i32
    %c0_i32_2 = arith.constant 0 : i32
    return %arg0, %c0_i32, %c0_i32_0, %c0_i32_1 : i32, i32, i32, i32
  }
  func.func @transform_1(%arg0: i32) -> (i32, i32) {
    %c0_i32 = arith.constant 0 : i32
    %c0_i32_0 = arith.constant 0 : i32
    %c0_i32_1 = arith.constant 0 : i32
    return %c0_i32, %c0_i32_0 : i32, i32
  }
  func.func @transform_2(%arg0: i32) -> (i32, i32) {
    %c0_i32 = arith.constant 0 : i32
    %c0_i32_0 = arith.constant 0 : i32
    %c0_i32_1 = arith.constant 0 : i32
    return %c0_i32, %c0_i32_0 : i32, i32
  }
  func.func @transform_3(%arg0: i32) -> (i32, i32) {
    %c0_i32 = arith.constant 0 : i32
    %c0_i32_0 = arith.constant 0 : i32
    %c0_i32_1 = arith.constant 0 : i32
    return %c0_i32, %c0_i32_0 : i32, i32
  }
  func.func @transform_4(%arg0: i32) -> (i32, i32) {
    %c0_i32 = arith.constant 0 : i32
    %c0_i32_0 = arith.constant 0 : i32
    %c0_i32_1 = arith.constant 0 : i32
    return %c0_i32, %c0_i32_0 : i32, i32
  }
  func.func @transform_5(%arg0: i32) -> (i32, i32) {
    %c0_i32 = arith.constant 0 : i32
    %c0_i32_0 = arith.constant 0 : i32
    %c0_i32_1 = arith.constant 0 : i32
    return %c0_i32, %c0_i32_0 : i32, i32
  }
  func.func @transform_6(%arg0: i32) -> (i32, i32) {
    %c0_i32 = arith.constant 0 : i32
    %c0_i32_0 = arith.constant 0 : i32
    %c0_i32_1 = arith.constant 0 : i32
    return %c0_i32, %c0_i32_0 : i32, i32
  }
  func.func @transform_7(%arg0: i32) -> (i32, i32, i32) {
    %c0_i32 = arith.constant 0 : i32
    %c0_i32_0 = arith.constant 0 : i32
    %c0_i32_1 = arith.constant 0 : i32
    return %arg0, %c0_i32, %c0_i32_0 : i32, i32, i32
  }
}

</mosaic_0001>

<bundles_post_ra>
// kernel: tpu_custom_call.1
= control target key start
LH: loop header
LB: loop body
LE: loop exit
PB: predicated region body
PF: predicated region fallthrough
CT: control target
= control target key end

     0   :  { %12 = vsyncpa [#allocation3], 0  ;;  %s5056_s0 = inlined_call_operand.vmem [shape: bf16[2,16,16,8], index: 0, kind: input, shape index: {}]   ;;  %s5057_s1 = inlined_call_operand.vmem [shape: bf16[8,4], index: 1, kind: input, shape index: {}]   ;;  %s5058_s2 = inlined_call_operand.vmem [shape: f32[1,4], index: 2, kind: input, shape index: {}]   ;;  %s5059_s3 = inlined_call_operand.vmem [shape: bf16[36,4], index: 3, kind: input, shape index: {}]   ;;  %s5060_s4 = inlined_call_operand.vmem [shape: f32[1,4], index: 4, kind: input, shape index: {}]   ;;  %s5061_s5 = inlined_call_operand.vmem [shape: bf16[4,8], index: 5, kind: input, shape index: {}]   ;;  %s5062_s6 = inlined_call_operand.vmem [shape: f32[1,8], index: 6, kind: input, shape index: {}]   ;;  %s5063_s7 = inlined_call_operand.hbm [shape: f32[2,16,128], index: 7, kind: output, shape index: {}]  }
   0x1   :  { %14 = vsyncpa [#allocation3 + $0x1], 0  ;;  %s3244_s24 = smov 0   ;;  %s3246_s25 = smov 0  }
   0x2   :  { %s3248_s26 = smov 0   ;;  %s3250_s27 = smov 0  }
   0x3 LB: > { %s3265_s28 = sadd.s32 4294967295, %s3180_s27   ;;  %s2760_s29 = sadd.s32 4294967294, %s3180_s27   ;;  %s3180_s27 = sphi %s3250_s27, %s5120_s27   ;;  %s3176_s26 = sphi %s3248_s26, %s5119_s26   ;;  %s3172_s25 = sphi %s3246_s25, %s5118_s25   ;;  %s3168_s24 = sphi %s3244_s24, %s5117_s24  }
   0x4   : > { %s3269_s30 = sadd.s32 1, %s3180_s27   ;;  %s179_s8 = sadd.s32 1, %s3176_s26 }
   0x5   : > { %s176_s9 = ssub.s32 %s3180_s27, %s3269_s30  ;;  %p189_p0 = scmp.ne.s32.totalorder %s3176_s26, %s3172_s25 }
   0x6   : > { %p177_p1 = scmp.eq.s32.totalorder %s176_s9, 0  ;;  %p190_p2 = scmp.eq.s32.totalorder %s3265_s28, 1 }
   0x7   : > { %p195_p3 = scmp.ne.s32.totalorder %s3172_s25, %s3168_s24  ;;  %p196_p4 = scmp.eq.s32.totalorder %s2760_s29, 1 }
   0x8   : > { %s3280_s10 = scalar_select %p177_p1, %s3176_s26, %s179_s8  }
   0x9   : > { %p3282_p5 = por %p190_p2, %p189_p0  ;;  %p3286_p6 = por %p196_p4, %p195_p3 }
   0xa   : > { %p2763_p7 = scmp.ge.s32.totalorder %s3180_s27, 1  ;;  %p240_p8 = scmp.lt.s32.totalorder %s3180_s27, 3 }
   0xc   : > { %p241_p9 = pnand %p2763_p7, %p240_p8 }
   0xe   : > { %244 = sbr.rel (%p241_p9) target bundleno = 1195 (0x4ab), region = 48 }
  0x13   : > { %v310_v0 = vld [vmem:[%s5057_s1] sm:$0xf]  ;;  %vm447_vm0 = vcmask 1043456   ;;  %p272_p10 = scmp.lt.s32.totalorder %s3265_s28, 1  ;;  %vm398_vm1 = vcmask 64512   ;;  %v5064_v18 = vmov 0  }
  0x14   : > { %3005 = vmatprep.subr.msk.bf16.mxu0 %vm447_vm0, %v310_v0  ;;  %3006 = vmatprep.subr.msk.bf16.mxu1 %vm447_vm0, %v310_v0  ;;  %v449_v1 = vsel %vm447_vm0, %v310_v0, 0  ;;  %v807_v19 = vrot.slane %v5064_v18, 1  ;;  %vm855_vm2 = vcmask 1047552   ;;  %vm856_vm3 = vsmask.f32 7424  ;;  %s3183_s20 = smov 4  }
  0x15   : > { %2898 = vmatpush3.bf16.msra.mxu0 %v449_v1  ;;  %3004 = vmatpush3.bf16.msra.mxu1 %v449_v1  ;;  %s273_s15 = scalar_select %p272_p10, %s3265_s28, 1  ;;  %vm3335_vm4 = vmand %vm855_vm2, %vm856_vm3  ;;  %v3350_v23 = vld [vmem:[%s5058_s2] ss:$0 sm:$0xff]  ;;  %vm788_vm5 = vcmask 1040384   ;;  %vm789_vm6 = vsmask.f32 256 }
  0x16   : > { %v3341_v21 = vsel %vm3335_vm4, %v807_v19, 0  ;;  %903 = vrot.lane.b32.xlu0 %v5064_v18, %s3183_s20  ;;  %s3184_s21 = smov 8   ;;  %s3185_s29 = smov 28   ;;  %vm3378_vm7 = vmand %vm788_vm5, %vm789_vm6  ;;  %vm1533_vm8 = vcmask 1041408   ;;  %vm1194_vm9 = vcmask 31744   ;;  %vm1275_vm10 = vcmask 97280  }
  0x17   : > { %s2842_s16 = sshll.u32 %s273_s15, 7  ;;  %951 = vrot.lane.b32.xlu1 %v3341_v21, %s3184_s21  ;;  %s3186_s8 = smov 16   ;;  %vm1308_vm11 = vcmask 130048   ;;  %vm1341_vm12 = vcmask 162816   ;;  %vm1374_vm13 = vcmask 195584   ;;  %vm1407_vm14 = vcmask 228352  }
  0x18   : > { %s3300_s19 = scalar_lea.vmem %s5056_s0, %s2842_s16  ;;  %s3187_s9 = smov 24   ;;  %vm1440_vm15 = vcmask 261120   ;;  %vm1500_vm0 = vcmask 293888   ;;  %vm2079_vm2 = vcmask 1041409   ;;  %vm2082_vm3 = vcmask 1042434  }
  0x19   : > { %v278_v2 = vld [vmem:[%s3300_s19] sm:$0xff]   ;;  %v280_v4 = vld [vmem:[%s3300_s19 + $0x8] sm:$0xff]   ;;  %v282_v6 = vld [vmem:[%s3300_s19 + $0x10] sm:$0xff]   ;;  %s3188_s13 = smov 12   ;;  %s3189_s14 = smov 32   ;;  %vm2088_vm5 = vcmask 1044484  }
  0x1a   : > { %v294_v3 = vld [vmem:[%s3300_s19 + $0x40] sm:$0xff]   ;;  %v296_v5 = vld [vmem:[%s3300_s19 + $0x48] sm:$0xff]   ;;  %v298_v7 = vld [vmem:[%s3300_s19 + $0x50] sm:$0xff]   ;;  %2899 = vmatprep.mubr.msk.bf16.mxu0 %vm398_vm1, %v278_v2  ;;  %s3190_s15 = smov 20   ;;  %vm2091_vm6 = vcmask 1045509   ;;  %s3192_s22 = smov 40  }
  0x1b   : > { %2915 = vmatprep.mubr.msk.bf16.mxu1 %vm398_vm1, %v294_v3  ;;  %2900 = vmatmul.mubr.msk.bf16.vlgmr.msra.gmra.mxu0 %vm398_vm1, %v280_v4  ;;  %v284_v8 = vld [vmem:[%s3300_s19 + $0x18] sm:$0xff]   ;;  %v286_v10 = vld [vmem:[%s3300_s19 + $0x20] sm:$0xff]   ;;  %v288_v12 = vld [vmem:[%s3300_s19 + $0x28] sm:$0xff]   ;;  %s3193_s23 = smov 56   ;;  %s3194_s16 = smov 112  }
  0x1c   : > { %2916 = vmatmul.mubr.msk.bf16.vlgmr.msra.gmra.mxu1 %vm398_vm1, %v296_v5  ;;  %2903 = vmatprep.mubr.msk.bf16.mxu0 %vm398_vm1, %v282_v6  ;;  %v300_v9 = vld [vmem:[%s3300_s19 + $0x58] sm:$0xff]   ;;  %v302_v11 = vld [vmem:[%s3300_s19 + $0x60] sm:$0xff]   ;;  %v304_v13 = vld [vmem:[%s3300_s19 + $0x68] sm:$0xff]   ;;  %s269_s17 = sand.u32 1, %s3172_s25  }
  0x1d   : > { %2919 = vmatprep.mubr.msk.bf16.mxu1 %vm398_vm1, %v298_v7  ;;  %v290_v14 = vld [vmem:[%s3300_s19 + $0x30] sm:$0xff]   ;;  %v292_v16 = vld [vmem:[%s3300_s19 + $0x38] sm:$0xff]   ;;  %s2764_s18 = sshll.u32 %s269_s17, 4 }
  0x1e   : > { %v306_v15 = vld [vmem:[%s3300_s19 + $0x70] sm:$0xff]   ;;  %v308_v17 = vld [vmem:[%s3300_s19 + $0x78] sm:$0xff]  }
  0x23   : > { %2904 = vmatmul.mubr.msk.bf16.gmra.mxu0 %vm398_vm1, %v284_v8 }
  0x24   : > { %2920 = vmatmul.mubr.msk.bf16.gmra.mxu1 %vm398_vm1, %v300_v9  ;;  %2907 = vmatprep.mubr.msk.bf16.mxu0 %vm398_vm1, %v286_v10 }
  0x25   : > { %2923 = vmatprep.mubr.msk.bf16.mxu1 %vm398_vm1, %v302_v11 }
  0x2b   : > { %2908 = vmatmul.mubr.msk.bf16.gmra.mxu0 %vm398_vm1, %v288_v12 }
  0x2c   : > { %2924 = vmatmul.mubr.msk.bf16.gmra.mxu1 %vm398_vm1, %v304_v13  ;;  %2911 = vmatprep.mubr.msk.bf16.mxu0 %vm398_vm1, %v290_v14 }
  0x2d   : > { %2927 = vmatprep.mubr.msk.bf16.mxu1 %vm398_vm1, %v306_v15 }
  0x33   : > { %2912 = vmatmul.mubr.msk.bf16.gmra.mxu0 %vm398_vm1, %v292_v16 }
  0x34   : > { %2928 = vmatmul.mubr.msk.bf16.gmra.mxu1 %vm398_vm1, %v308_v17 }
  0xdb   : > { %v2901_v22 = vpop.f32.mrf.mxu0 }
  0xdc   : > { %v2917_v24 = vpop.f32.mrf.mxu1  ;;  %v494_v27 = vadd.f32 %v2901_v22, %v3350_v23 }
  0xdd   : > { %v485_v25 = vpop.f32.mrf.mxu0  ;;  %v558_v30 = vadd.f32 %v2917_v24, %v3350_v23 }
  0xde   : > { %v549_v26 = vpop.f32.mrf.mxu1  ;;  %v614_v34 = vmax.f32 %v494_v27, 0.0  ;;  %v486_v40 = vadd.f32 %v3350_v23, %v485_v25 }
  0xdf   : > { %v2902_v28 = vpop.f32.mrf.mxu0  ;;  %v630_v36 = vmax.f32 %v558_v30, 0.0  ;;  %v550_v48 = vadd.f32 %v3350_v23, %v549_v26 }
  0xe0   : > { %v2918_v29 = vpop.f32.mrf.mxu1  ;;  %v497_v31 = vadd.f32 %v2902_v28, %v3350_v23  ;;  %v612_v44 = vmax.f32 %v486_v40, 0.0 }
  0xe1   : > { %v561_v32 = vadd.f32 %v2918_v29, %v3350_v23  ;;  %v488_v33 = vpop.f32.mrf.mxu0  ;;  %v628_v52 = vmax.f32 %v550_v48, 0.0 }
  0xe2   : > { %v615_v35 = vmax.f32 %v497_v31, 0.0  ;;  %v489_v39 = vadd.f32 %v3350_v23, %v488_v33  ;;  %v552_v43 = vpop.f32.mrf.mxu1 }
  0xe3   : > { %v631_v38 = vmax.f32 %v561_v32, 0.0  ;;  %v553_v46 = vadd.f32 %v3350_v23, %v552_v43  ;;  %v2905_v60 = vpop.f32.mrf.mxu0 }
  0xe4   : > { %v645_v37 = vpack.c.bf16 %v615_v35, %v614_v34  ;;  %v613_v42 = vmax.f32 %v489_v39, 0.0  ;;  %v2921_v4 = vpop.f32.mrf.mxu1  ;;  %v510_v5 = vadd.f32 %v2905_v60, %v3350_v23 }
  0xe5   : > { %v653_v41 = vpack.c.bf16 %v631_v38, %v630_v36  ;;  %v629_v49 = vmax.f32 %v553_v46, 0.0  ;;  %v501_v0 = vpop.f32.mrf.mxu0  ;;  %v574_v15 = vadd.f32 %v2921_v4, %v3350_v23 }
  0xe6   : > { %1130 = vrot.lane.b32.xlu0 %v645_v37, %s3185_s29  ;;  %1034 = vrot.lane.b32.xlu1 %v645_v37, %s3186_s8  ;;  %v3362_v45 = vpack.c.bf16 %v613_v42, %v612_v44  ;;  %v675_v47 = vshrl.u32 %v645_v37, 16  ;;  %v678_v51 = vshll.u32 %v645_v37, 16  ;;  %v565_v9 = vpop.f32.mrf.mxu1  ;;  %v618_v10 = vmax.f32 %v510_v5, 0.0  ;;  %v3085_v5 = vld [vmem:[%s5059_s3 + $0x10] ss:$0 sps:$4 sm:$0x33]  }
  0xe7   : > { %v3372_v53 = vpack.c.bf16 %v629_v49, %v628_v52  ;;  %v731_v59 = vshrl.u32 %v653_v41, 16  ;;  %v734_v63 = vshll.u32 %v653_v41, 16  ;;  %v2906_v3 = vpop.f32.mrf.mxu0  ;;  %v634_v19 = vmax.f32 %v574_v15, 0.0  ;;  %3007 = vmatprep.subr.msk.bf16.mxu1 %vm1533_vm8, %v3085_v5 }
  0xe8   : > { %v677_v50 = vrot.slane %v675_v47, 7  ;;  %v811_v55 = vrot.slane %v678_v51, 1  ;;  %v513_v6 = vadd.f32 %v2906_v3, %v3350_v23  ;;  %v2922_v13 = vpop.f32.mrf.mxu1  ;;  %v668_v17 = vshrl.u32 %v3362_v45, 16 }
  0xe9   : > { %v733_v62 = vrot.slane %v731_v59, 7  ;;  %v827_v2 = vrot.slane %v734_v63, 1  ;;  %v577_v16 = vadd.f32 %v2922_v13, %v3350_v23  ;;  %v671_v25 = vshll.u32 %v3362_v45, 16  ;;  %v504_v35 = vpop.f32.mrf.mxu0 }
  0xea   : > { %1146 = vrot.lane.b32.xlu0 %v653_v41, %s3185_s29  ;;  %907 = vrot.lane.b32.xlu1 %v645_v37, %s3183_s20  ;;  %v680_v54 = vor.u32 %v678_v51, %v677_v50  ;;  %v812_v58 = vor.u32 %v811_v55, %v675_v47  ;;  %v619_v11 = vmax.f32 %v513_v6, 0.0  ;;  %v670_v24 = vrot.slane %v668_v17, 7 }
  0xeb   : > { %v736_v1 = vor.u32 %v734_v63, %v733_v62  ;;  %v828_v8 = vor.u32 %v827_v2, %v731_v59  ;;  %v635_v22 = vmax.f32 %v577_v16, 0.0  ;;  %v809_v28 = vrot.slane %v671_v25, 1  ;;  %v2909_v62 = vpop.f32.mrf.mxu0 }
  0xec   : > { %v3384_v57 = vsel %vm3378_vm7, 0, %v680_v54  ;;  %v860_v61 = vsel %vm3335_vm4, %v812_v58, 0  ;;  %v647_v14 = vpack.c.bf16 %v619_v11, %v618_v10  ;;  %v673_v27 = vor.u32 %v671_v25, %v670_v24 }
  0xed   : > { %v3401_v7 = vsel %vm3378_vm7, 0, %v736_v1  ;;  %v868_v12 = vsel %vm3335_vm4, %v828_v8, 0  ;;  %v3419_v26 = vpack.c.bf16 %v635_v22, %v634_v19  ;;  %v724_v29 = vshrl.u32 %v3372_v53, 16  ;;  %v3485_v2 = vpop.f32.mrf.mxu0  ;;  %v3087_v22 = vld [vmem:[%s5059_s3] sm:$0xff]  }
  0xee   : > { %1050 = vrot.lane.b32.xlu1 %v653_v41, %s3186_s8  ;;  %905 = vrot.lane.b32.xlu0 %v3362_v45, %s3183_s20  ;;  %v727_v30 = vshll.u32 %v3372_v53, 16  ;;  %v3429_v31 = vsel %vm3378_vm7, 0, %v673_v27  ;;  %v810_v32 = vor.u32 %v809_v28, %v668_v17  ;;  %v502_v39 = vadd.f32 %v3350_v23, %v501_v0 }
  0xef   : > { %v726_v33 = vrot.slane %v724_v29, 7  ;;  %v505_v40 = vadd.f32 %v3350_v23, %v504_v35  ;;  %v566_v47 = vadd.f32 %v3350_v23, %v565_v9  ;;  %v689_v49 = vshrl.u32 %v647_v14, 16  ;;  %v2910_v6 = vpop.f32.mrf.mxu0 }
  0xf0   : > { %v825_v34 = vrot.slane %v727_v30, 1  ;;  %v859_v36 = vsel %vm3335_vm4, %v810_v32, 0  ;;  %v616_v43 = vmax.f32 %v502_v39, 0.0  ;;  %v748_v1 = vshll.u32 %v3419_v26, 16  ;;  %v3536_v39 = vpop.permute.xlu0 %903 }
  0xf1   : > { %v729_v37 = vor.u32 %v727_v30, %v726_v33  ;;  %v617_v44 = vmax.f32 %v505_v40, 0.0  ;;  %v632_v50 = vmax.f32 %v566_v47, 0.0  ;;  %v691_v52 = vrot.slane %v689_v49, 7  ;;  %v3538_v40 = vpop.permute.xlu1 %951 }
  0xf2   : > { %923 = vrot.lane.b32.xlu1 %v653_v41, %s3183_s20  ;;  %1032 = vrot.lane.b32.xlu0 %v3362_v45, %s3186_s8  ;;  %v826_v38 = vor.u32 %v825_v34, %v724_v29  ;;  %v568_v45 = vpop.f32.mrf.mxu1  ;;  %v831_v4 = vrot.slane %v748_v1, 1  ;;  %v526_v9 = vadd.f32 %v2909_v62, %v3350_v23  ;;  %v529_v10 = vadd.f32 %v2910_v6, %v3350_v23 }
  0xf3   : > { %v3443_v41 = vsel %vm3378_vm7, 0, %v729_v37  ;;  %v3453_v46 = vpack.c.bf16 %v617_v44, %v616_v43  ;;  %v569_v48 = vadd.f32 %v3350_v23, %v568_v45  ;;  %v1535_v13 = vsel %vm1533_vm8, %v3085_v5, 0 }
  0xf4   : > { %v867_v42 = vsel %vm3335_vm4, %v826_v38, 0  ;;  %v2925_v8 = vpop.f32.mrf.mxu1  ;;  %2932 = vmatpush3.bf16.msra.mxu1 %v1535_v13  ;;  %v622_v16 = vmax.f32 %v526_v9, 0.0  ;;  %v623_v17 = vmax.f32 %v529_v10, 0.0 }
  0xf5   : > { %v633_v51 = vmax.f32 %v569_v48, 0.0  ;;  %v682_v28 = vshrl.u32 %v3453_v46, 16  ;;  %v685_v29 = vshll.u32 %v3453_v46, 16  ;;  %v520_v48 = vpop.f32.mrf.mxu0 }
  0xf6   : > { %1144 = vrot.lane.b32.xlu1 %v3372_v53, %s3185_s29  ;;  %1048 = vrot.lane.b32.xlu0 %v3372_v53, %s3186_s8  ;;  %v3507_v15 = vpop.f32.mrf.mxu1  ;;  %v3516_v25 = vpack.c.bf16 %v623_v17, %v622_v16 }
  0xf7   : > { %v3464_v54 = vpack.c.bf16 %v633_v51, %v632_v50  ;;  %v684_v33 = vrot.slane %v682_v28, 7  ;;  %v813_v34 = vrot.slane %v685_v29, 1  ;;  %v518_v51 = vadd.f32 %v3350_v23, %v3485_v2 }
  0xf8   : > { %v2926_v24 = vpop.f32.mrf.mxu1  ;;  %v703_v13 = vshrl.u32 %v3516_v25, 16 }
  0xf9   : > { %v593_v27 = vadd.f32 %v2926_v24, %v3350_v23  ;;  %v814_v37 = vor.u32 %v813_v34, %v682_v28  ;;  %v738_v38 = vshrl.u32 %v3464_v54, 16  ;;  %v741_v45 = vshll.u32 %v3464_v54, 16 }
  0xfa   : > { %921 = vrot.lane.b32.xlu1 %v3372_v53, %s3183_s20  ;;  %1098 = vrot.lane.b32.xlu0 %v3384_v57, %s3187_s9  ;;  %v692_v53 = vshll.u32 %v647_v14, 16  ;;  %v705_v17 = vrot.slane %v703_v13, 7 }
  0xfb   : > { %v639_v32 = vmax.f32 %v593_v27, 0.0  ;;  %v861_v43 = vsel %vm3335_vm4, %v814_v37, 0  ;;  %v740_v44 = vrot.slane %v738_v38, 7  ;;  %v829_v50 = vrot.slane %v741_v45, 1 }
  0xfc   : > { %v694_v55 = vor.u32 %v692_v53, %v691_v52  ;;  %v815_v58 = vrot.slane %v692_v53, 1  ;;  %v521_v52 = vadd.f32 %v3350_v23, %v520_v48 }
  0xfe   : > { %1001 = vrot.lane.b32.xlu1 %v3384_v57, %s3188_s13  ;;  %1162 = vrot.lane.b32.xlu0 %v860_v61, %s3189_s14  ;;  %v3472_v59 = vsel %vm3378_vm7, 0, %v694_v55  ;;  %v816_v60 = vor.u32 %v815_v58, %v689_v49  ;;  %v743_v49 = vor.u32 %v741_v45, %v740_v44  ;;  %v830_v58 = vor.u32 %v829_v50, %v738_v38 }
 0x100   : > { %v862_v63 = vsel %vm3335_vm4, %v816_v60, 0  ;;  %v3566_v55 = vsel %vm3378_vm7, 0, %v743_v49  ;;  %v620_v60 = vmax.f32 %v518_v51, 0.0 }
 0x102   : > { %1067 = vrot.lane.b32.xlu1 %v860_v61, %s3190_s15  ;;  %955 = vrot.lane.b32.xlu0 %v860_v61, %s3184_s21  ;;  %v745_v61 = vshrl.u32 %v3419_v26, 16 }
 0x104   : > { %v747_v0 = vrot.slane %v745_v61, 7 }
 0x106   : > { %1017 = vrot.lane.b32.xlu1 %v3401_v7, %s3188_s13  ;;  %1114 = vrot.lane.b32.xlu0 %v3401_v7, %s3187_s9  ;;  %v750_v3 = vor.u32 %v748_v1, %v747_v0  ;;  %v584_v0 = vpop.f32.mrf.mxu1  ;;  %v869_v1 = vsel %vm3335_vm4, %v830_v58, 0 }
 0x108   : > { %v3497_v11 = vsel %vm3378_vm7, 0, %v750_v3  ;;  %v582_v3 = vadd.f32 %v3350_v23, %v3507_v15 }
 0x10a   : > { %1083 = vrot.lane.b32.xlu1 %v868_v12, %s3190_s15  ;;  %1178 = vrot.lane.b32.xlu0 %v868_v12, %s3189_s14 }
 0x10e   : > { %1038 = vrot.lane.b32.xlu1 %v647_v14, %s3186_s8  ;;  %971 = vrot.lane.b32.xlu0 %v868_v12, %s3184_s21  ;;  %v832_v12 = vor.u32 %v831_v4, %v745_v61  ;;  %v621_v61 = vmax.f32 %v521_v52, 0.0  ;;  %v585_v4 = vadd.f32 %v3350_v23, %v584_v0 }
 0x110   : > { %v870_v19 = vsel %vm3335_vm4, %v832_v12, 0  ;;  %v3579_v2 = vpack.c.bf16 %v621_v61, %v620_v60  ;;  %v637_v9 = vmax.f32 %v585_v4, 0.0 }
 0x112   : > { %911 = vrot.lane.b32.xlu1 %v647_v14, %s3183_s20  ;;  %1134 = vrot.lane.b32.xlu0 %v647_v14, %s3185_s29  ;;  %v3086_v14 = vld [vmem:[%s5059_s3 + $0x8] sm:$0xff]   ;;  %v699_v0 = vshll.u32 %v3579_v2, 16 }
 0x113   : > { %2933 = vmatprep.subr.bf16.mxu1 %v3086_v14 }
 0x114   : > { %2934 = vmatpush3.bf16.msra.mxu1 %v3086_v14 }
 0x115   : > { %2935 = vmatprep.subr.bf16.mxu1 %v3087_v22 }
 0x116   : > { %1054 = vrot.lane.b32.xlu1 %v3419_v26, %s3186_s8  ;;  %1150 = vrot.lane.b32.xlu0 %v3419_v26, %s3185_s29 }
 0x118   : > { %2936 = vmatpush3.bf16.msra.mxu1 %v3087_v22 }
 0x11a   : > { %927 = vrot.lane.b32.xlu1 %v3419_v26, %s3183_s20  ;;  %999 = vrot.lane.b32.xlu0 %v3429_v31, %s3188_s13  ;;  %v590_v26 = vadd.f32 %v2925_v8, %v3350_v23  ;;  %v636_v8 = vmax.f32 %v582_v3, 0.0 }
 0x11c   : > { %v638_v30 = vmax.f32 %v590_v26, 0.0  ;;  %v3600_v14 = vpack.c.bf16 %v637_v9, %v636_v8 }
 0x11e   : > { %953 = vrot.lane.b32.xlu1 %v859_v36, %s3184_s21  ;;  %1065 = vrot.lane.b32.xlu0 %v859_v36, %s3190_s15  ;;  %v3529_v35 = vpack.c.bf16 %v639_v32, %v638_v30  ;;  %v687_v36 = vor.u32 %v685_v29, %v684_v33 }
 0x120   : > { %v759_v28 = vshrl.u32 %v3529_v35, 16 }
 0x122   : > { %1112 = vrot.lane.b32.xlu1 %v3443_v41, %s3187_s9  ;;  %1176 = vrot.lane.b32.xlu0 %v867_v42, %s3189_s14  ;;  %v761_v34 = vrot.slane %v759_v28, 7 }
 0x126   : > { %969 = vrot.lane.b32.xlu1 %v867_v42, %s3184_s21  ;;  %1015 = vrot.lane.b32.xlu0 %v3443_v41, %s3188_s13 }
 0x12a   : > { %1132 = vrot.lane.b32.xlu1 %v3453_v46, %s3185_s29  ;;  %1081 = vrot.lane.b32.xlu0 %v867_v42, %s3190_s15  ;;  %v3542_v42 = vsel %vm3378_vm7, 0, %v687_v36  ;;  %v762_v36 = vshll.u32 %v3529_v35, 16 }
 0x12c   : > { %v764_v45 = vor.u32 %v762_v36, %v761_v34  ;;  %v835_v48 = vrot.slane %v762_v36, 1 }
 0x12e   : > { %909 = vrot.lane.b32.xlu1 %v3453_v46, %s3183_s20  ;;  %1036 = vrot.lane.b32.xlu0 %v3453_v46, %s3186_s8  ;;  %v3651_v60 = vsel %vm3378_vm7, 0, %v764_v45  ;;  %v836_v61 = vor.u32 %v835_v48, %v759_v28 }
 0x12f   : > { %5079 = vst [vmem:[#allocation10_spill] sm:$0xff] %v3651_v60 }
 0x130   : > { %v3663_v9 = vsel %vm3335_vm4, %v836_v61, 0 }
 0x132   : > { %1148 = vrot.lane.b32.xlu1 %v3464_v54, %s3185_s29  ;;  %1052 = vrot.lane.b32.xlu0 %v3464_v54, %s3186_s8 }
 0x136   : > { %925 = vrot.lane.b32.xlu1 %v3464_v54, %s3183_s20  ;;  %1102 = vrot.lane.b32.xlu0 %v3472_v59, %s3187_s9 }
 0x13a   : > { %1005 = vrot.lane.b32.xlu1 %v3472_v59, %s3188_s13  ;;  %1166 = vrot.lane.b32.xlu0 %v862_v63, %s3189_s14 }
 0x13e   : > { %1071 = vrot.lane.b32.xlu1 %v862_v63, %s3190_s15  ;;  %959 = vrot.lane.b32.xlu0 %v862_v63, %s3184_s21 }
 0x142   : > { %1021 = vrot.lane.b32.xlu1 %v3497_v11, %s3188_s13  ;;  %1118 = vrot.lane.b32.xlu0 %v3497_v11, %s3187_s9 }
 0x146   : > { %1087 = vrot.lane.b32.xlu1 %v870_v19, %s3190_s15  ;;  %1182 = vrot.lane.b32.xlu0 %v870_v19, %s3189_s14 }
 0x14a   : > { %1042 = vrot.lane.b32.xlu1 %v3516_v25, %s3186_s8  ;;  %975 = vrot.lane.b32.xlu0 %v870_v19, %s3184_s21  ;;  %v706_v19 = vshll.u32 %v3516_v25, 16 }
 0x14c   : > { %v708_v26 = vor.u32 %v706_v19, %v705_v17  ;;  %v819_v27 = vrot.slane %v706_v19, 1  ;;  %v817_v17 = vrot.slane %v699_v0, 1  ;;  %v663_v19 = vrot.slane %v5064_v18, 7 }
 0x14e   : > { %915 = vrot.lane.b32.xlu1 %v3516_v25, %s3183_s20  ;;  %1138 = vrot.lane.b32.xlu0 %v3516_v25, %s3185_s29  ;;  %v2913_v25 = vpop.f32.mrf.mxu0  ;;  %v3626_v32 = vsel %vm3378_vm7, 0, %v708_v26  ;;  %v820_v33 = vor.u32 %v819_v27, %v703_v13  ;;  %v696_v13 = vshrl.u32 %v3579_v2, 16 }
 0x14f   : > { %5076 = vst [vmem:[#allocation7_spill] sm:$0xff] %v3626_v32  ;;  %v542_v50 = vadd.f32 %v2913_v25, %v3350_v23 }
 0x150   : > { %v3633_v37 = vpop.f32.mrf.mxu0  ;;  %v864_v44 = vsel %vm3335_vm4, %v820_v33, 0  ;;  %v818_v25 = vor.u32 %v817_v17, %v696_v13  ;;  %v698_v33 = vrot.slane %v696_v13, 7 }
 0x152   : > { %1058 = vrot.lane.b32.xlu1 %v3529_v35, %s3186_s8  ;;  %1154 = vrot.lane.b32.xlu0 %v3529_v35, %s3185_s29  ;;  %v2914_v49 = vpop.f32.mrf.mxu0  ;;  %v863_v48 = vsel %vm3335_vm4, %v818_v25, 0 }
 0x153   : > { %v545_v51 = vadd.f32 %v2914_v49, %v3350_v23  ;;  %v701_v49 = vor.u32 %v699_v0, %v698_v33 }
 0x154   : > { %v536_v25 = vpop.f32.mrf.mxu0 }
 0x155   : > { %v627_v3 = vmax.f32 %v545_v51, 0.0  ;;  %v3706_v0 = vsel %vm3378_vm7, 0, %v701_v49 }
 0x156   : > { %1100 = vrot.lane.b32.xlu1 %v3542_v42, %s3187_s9  ;;  %1164 = vrot.lane.b32.xlu0 %v861_v43, %s3189_s14 }
 0x158   : > { %v3550_v46 = vpop.permute.xlu0 %1130  ;;  %v3552_v47 = vpop.permute.xlu1 %1034 }
 0x15a   : > { %957 = vrot.lane.b32.xlu1 %v861_v43, %s3184_s21  ;;  %1003 = vrot.lane.b32.xlu0 %v3542_v42, %s3188_s13 }
 0x15c   : > { %v3560_v53 = vpop.permute.xlu0 %1146  ;;  %v3562_v54 = vpop.permute.xlu1 %907 }
 0x15d   : > { %5074 = vst [vmem:[#allocation5_spill] sm:$0xff] %v3560_v53 }
 0x15e   : > { %1116 = vrot.lane.b32.xlu1 %v3566_v55, %s3187_s9  ;;  %1069 = vrot.lane.b32.xlu0 %v861_v43, %s3190_s15 }
 0x160   : > { %v3571_v62 = vpop.permute.xlu1 %1050  ;;  %v3573_v63 = vpop.permute.xlu0 %905 }
 0x162   : > { %973 = vrot.lane.b32.xlu1 %v869_v1, %s3184_s21  ;;  %1180 = vrot.lane.b32.xlu0 %v869_v1, %s3189_s14 }
 0x164   : > { %v3584_v5 = vpop.permute.xlu1 %923  ;;  %v3586_v6 = vpop.permute.xlu0 %1032 }
 0x166   : > { %1136 = vrot.lane.b32.xlu1 %v3579_v2, %s3185_s29  ;;  %1019 = vrot.lane.b32.xlu0 %v3566_v55, %s3188_s13 }
 0x168   : > { %v3592_v10 = vpop.permute.xlu1 %1144  ;;  %v3594_v12 = vpop.permute.xlu0 %1048 }
 0x169   : > { %5075 = vst [vmem:[#allocation6_spill] sm:$0xff] %v3592_v10 }
 0x16a   : > { %913 = vrot.lane.b32.xlu1 %v3579_v2, %s3183_s20  ;;  %1085 = vrot.lane.b32.xlu0 %v869_v1, %s3190_s15  ;;  %v626_v1 = vmax.f32 %v542_v50, 0.0  ;;  %v755_v50 = vshll.u32 %v3600_v14, 16 }
 0x16c   : > { %v3602_v15 = vpop.permute.xlu1 %921  ;;  %v3604_v16 = vpop.permute.xlu0 %1098  ;;  %v3671_v26 = vpack.c.bf16 %v627_v3, %v626_v1  ;;  %v833_v13 = vrot.slane %v755_v50, 1 }
 0x16e   : > { %1152 = vrot.lane.b32.xlu1 %v3600_v14, %s3185_s29  ;;  %1040 = vrot.lane.b32.xlu0 %v3579_v2, %s3186_s8  ;;  %v3679_v2 = vsel %vm3378_vm7, 0, %v663_v19 }
 0x16f   : > { %v1197_v45 = vsel %vm1194_vm9, %v3679_v2, %v3536_v39 }
 0x170   : > { %v3611_v22 = vpop.permute.xlu1 %1001  ;;  %v3613_v24 = vpop.permute.xlu0 %1162  ;;  %v1244_v51 = vsel %vm398_vm1, %v1197_v45, %v3538_v40 }
 0x172   : > { %929 = vrot.lane.b32.xlu1 %v3600_v14, %s3183_s20  ;;  %1056 = vrot.lane.b32.xlu0 %v3600_v14, %s3186_s8 }
 0x174   : > { %v3620_v29 = vpop.permute.xlu1 %1067  ;;  %v3622_v30 = vpop.permute.xlu0 %955 }
 0x176   : > { %1009 = vrot.lane.b32.xlu1 %v3626_v32, %s3188_s13  ;;  %1106 = vrot.lane.b32.xlu0 %v3626_v32, %s3187_s9 }
 0x178   : > { %v3635_v38 = vpop.permute.xlu1 %1017  ;;  %v3637_v43 = vpop.permute.xlu0 %1114 }
 0x179   : > { %5077 = vst [vmem:[#allocation8_spill] sm:$0xff] %v3637_v43 }
 0x17a   : > { %1075 = vrot.lane.b32.xlu1 %v864_v44, %s3190_s15  ;;  %1170 = vrot.lane.b32.xlu0 %v864_v44, %s3189_s14 }
 0x17c   : > { %v3645_v52 = vpop.permute.xlu1 %1083  ;;  %v3647_v58 = vpop.permute.xlu0 %1178 }
 0x17d   : > { %5078 = vst [vmem:[#allocation9_spill] sm:$0xff] %v3647_v58 }
 0x17e   : > { %1025 = vrot.lane.b32.xlu1 %v3651_v60, %s3188_s13  ;;  %963 = vrot.lane.b32.xlu0 %v864_v44, %s3184_s21  ;;  %v752_v44 = vshrl.u32 %v3600_v14, 16  ;;  %v3708_v14 = vpop.f32.mrf.mxu1 }
 0x180   : > { %v3657_v4 = vpop.permute.xlu1 %1038  ;;  %v3659_v8 = vpop.permute.xlu0 %971  ;;  %v754_v3 = vrot.slane %v752_v44, 7 }
 0x181   : > { %v597_v45 = vpop.f32.mrf.mxu1 }
 0x182   : > { %1091 = vrot.lane.b32.xlu1 %v3663_v9, %s3190_s15  ;;  %1122 = vrot.lane.b32.xlu0 %v3651_v60, %s3187_s9  ;;  %v757_v49 = vor.u32 %v755_v50, %v754_v3 }
 0x184   : > { %v3673_v27 = vpop.permute.xlu1 %911  ;;  %v3675_v28 = vpop.permute.xlu0 %1134 }
 0x186   : > { %1046 = vrot.lane.b32.xlu1 %v3671_v26, %s3186_s8  ;;  %1142 = vrot.lane.b32.xlu0 %v3671_v26, %s3185_s29 }
 0x188   : > { %v3685_v34 = vpop.permute.xlu1 %1054  ;;  %v3687_v36 = vpop.permute.xlu0 %1150 }
 0x189   : > { %5080 = vst [vmem:[#allocation11_spill] sm:$0xff] %v3687_v36 }
 0x18a   : > { %919 = vrot.lane.b32.xlu1 %v3671_v26, %s3183_s20  ;;  %1168 = vrot.lane.b32.xlu0 %v863_v48, %s3189_s14 }
 0x18c   : > { %v3701_v61 = vpop.permute.xlu1 %927  ;;  %v1000_v1 = vpop.permute.xlu0 %999 }
 0x18d   : > { %v1277_v39 = vsel %vm1275_vm10, %v1244_v51, %v1000_v1  ;;  %v834_v51 = vor.u32 %v833_v13, %v752_v44  ;;  %v2930_v44 = vpop.f32.mrf.mxu1 }
 0x18e   : > { %1104 = vrot.lane.b32.xlu1 %v3706_v0, %s3187_s9  ;;  %1007 = vrot.lane.b32.xlu0 %v3706_v0, %s3188_s13  ;;  %v1310_v17 = vsel %vm1308_vm11, %v1277_v39, %v3586_v6  ;;  %v534_v39 = vadd.f32 %v3350_v23, %v3633_v37  ;;  %v609_v53 = vadd.f32 %v2930_v44, %v3350_v23 }
 0x190   : > { %v3714_v40 = vpop.permute.xlu1 %953  ;;  %v1066_v19 = vpop.permute.xlu0 %1065  ;;  %v624_v37 = vmax.f32 %v534_v39, 0.0 }
 0x191   : > { %v1343_v33 = vsel %vm1341_vm12, %v1310_v17, %v1066_v19  ;;  %v537_v17 = vadd.f32 %v3350_v23, %v536_v25  ;;  %v600_v25 = vpop.f32.mrf.mxu1 }
 0x192   : > { %v1376_v1 = vsel %vm1374_vm13, %v1343_v33, %v3604_v16  ;;  %961 = vrot.lane.b32.xlu1 %v863_v48, %s3184_s21  ;;  %1073 = vrot.lane.b32.xlu0 %v863_v48, %s3190_s15  ;;  %v3737_v48 = vsel %vm3378_vm7, 0, %v757_v49  ;;  %v717_v33 = vshrl.u32 %v3671_v26, 16 }
 0x193   : > { %v1409_v6 = vsel %vm1407_vm14, %v1376_v1, %v3550_v46  ;;  %v871_v46 = vsel %vm3335_vm4, %v834_v51, 0  ;;  %v625_v3 = vmax.f32 %v537_v17, 0.0  ;;  %v598_v51 = vadd.f32 %v3350_v23, %v597_v45 }
 0x194   : > { %v3728_v19 = vpop.permute.xlu1 %1112  ;;  %v3730_v50 = vpop.permute.xlu0 %1176  ;;  %v1442_v16 = vsel %vm1440_vm15, %v1409_v6, %v3613_v24  ;;  %v601_v1 = vadd.f32 %v3350_v23, %v600_v25  ;;  %v719_v17 = vrot.slane %v717_v33, 7 }
 0x195   : > { %5081 = vst [vmem:[#allocation12_spill] sm:$0xff] %v3728_v19  ;;  %5082 = vst [vmem:[#allocation13_spill] sm:$0xff] %v3730_v50  ;;  %2937 = vmatprep.mubr.msk.bf16.mxu1 %vm1500_vm0, %v1442_v16  ;;  %v650_v49 = vpack.c.bf16 %v625_v3, %v624_v37  ;;  %v720_v16 = vshll.u32 %v3671_v26, 16  ;;  %v640_v18 = vmax.f32 %v598_v51, 0.0  ;;  %v643_v19 = vmax.f32 %v609_v53, 0.0 }
 0x196   : > { %1120 = vrot.lane.b32.xlu1 %v3737_v48, %s3187_s9  ;;  %1184 = vrot.lane.b32.xlu0 %v871_v46, %s3189_s14  ;;  %v641_v60 = vmax.f32 %v601_v1, 0.0 }
 0x197   : > { %v722_v45 = vor.u32 %v720_v16, %v719_v17  ;;  %v823_v3 = vrot.slane %v720_v16, 1  ;;  %v710_v50 = vshrl.u32 %v650_v49, 16  ;;  %v713_v1 = vshll.u32 %v650_v49, 16 }
 0x198   : > { %v3744_v13 = vpop.permute.xlu1 %969  ;;  %v3746_v24 = vpop.permute.xlu0 %1015  ;;  %v3767_v25 = vpack.c.bf16 %v641_v60, %v640_v18  ;;  %v606_v16 = vadd.f32 %v3708_v14, %v3350_v23 }
 0x199   : > { %v824_v51 = vor.u32 %v823_v3, %v717_v33  ;;  %v712_v60 = vrot.slane %v710_v50, 7 }
 0x19a   : > { %977 = vrot.lane.b32.xlu1 %v871_v46, %s3184_s21  ;;  %1023 = vrot.lane.b32.xlu0 %v3737_v48, %s3188_s13  ;;  %v642_v10 = vmax.f32 %v606_v16, 0.0  ;;  %v769_v32 = vshll.u32 %v3767_v25, 16 }
 0x19b   : > { %v866_v33 = vsel %vm3335_vm4, %v824_v51, 0  ;;  %v715_v43 = vor.u32 %v713_v1, %v712_v60 }
 0x19c   : > { %v3754_v6 = vpop.permute.xlu1 %1132  ;;  %v3756_v39 = vpop.permute.xlu0 %1081  ;;  %v3803_v44 = vpack.c.bf16 %v643_v19, %v642_v10 }
 0x19d   : > { %5083 = vst [vmem:[#allocation14_spill] sm:$0xff] %v3756_v39  ;;  %v3807_v51 = vsel %vm3378_vm7, 0, %v715_v43 }
 0x19e   : > { %1140 = vrot.lane.b32.xlu1 %v650_v49, %s3185_s29  ;;  %1089 = vrot.lane.b32.xlu0 %v871_v46, %s3190_s15  ;;  %v3775_v46 = vsel %vm3378_vm7, 0, %v722_v45  ;;  %5084 = vst [vmem:[#allocation15_spill] sm:$0xff] %v3807_v51 }
 0x1a0   : > { %v3761_v36 = vpop.permute.xlu1 %909  ;;  %v3763_v37 = vpop.permute.xlu0 %1036 }
 0x1a2   : > { %917 = vrot.lane.b32.xlu1 %v650_v49, %s3183_s20  ;;  %1044 = vrot.lane.b32.xlu0 %v650_v49, %s3186_s8  ;;  %v821_v49 = vrot.slane %v713_v1, 1  ;;  %v875_v1 = vshrl.u32 %v3803_v44, 16 }
 0x1a4   : > { %v3769_v58 = vpop.permute.xlu1 %1148  ;;  %v3771_v26 = vpop.permute.xlu0 %1052  ;;  %v822_v39 = vor.u32 %v821_v49, %v710_v50  ;;  %v877_v19 = vrot.slane %v875_v1, 7 }
 0x1a6   : > { %1156 = vrot.lane.b32.xlu1 %v3767_v25, %s3185_s29  ;;  %1110 = vrot.lane.b32.xlu0 %v3775_v46, %s3187_s9  ;;  %v865_v16 = vsel %vm3335_vm4, %v822_v39, 0  ;;  %v878_v39 = vshll.u32 %v3803_v44, 16 }
 0x1a8   : > { %v3781_v17 = vpop.permute.xlu1 %925  ;;  %v3783_v18 = vpop.permute.xlu0 %1102  ;;  %v880_v49 = vor.u32 %v878_v39, %v877_v19 }
 0x1aa   : > { %1013 = vrot.lane.b32.xlu1 %v3775_v46, %s3188_s13  ;;  %1174 = vrot.lane.b32.xlu0 %v866_v33, %s3189_s14  ;;  %v882_v19 = vsel %vm3378_vm7, 0, %v880_v49  ;;  %v837_v49 = vrot.slane %v769_v32, 1 }
 0x1ac   : > { %v3793_v45 = vpop.permute.xlu1 %1005  ;;  %v3795_v3 = vpop.permute.xlu0 %1166 }
 0x1ae   : > { %1079 = vrot.lane.b32.xlu1 %v866_v33, %s3190_s15  ;;  %967 = vrot.lane.b32.xlu0 %v866_v33, %s3184_s21 }
 0x1b0   : > { %v3799_v23 = vpop.permute.xlu1 %1071  ;;  %v3801_v14 = vpop.permute.xlu0 %959 }
 0x1b2   : > { %1108 = vrot.lane.b32.xlu1 %v3807_v51, %s3187_s9  ;;  %1172 = vrot.lane.b32.xlu0 %v865_v16, %s3189_s14 }
 0x1b4   : > { %v3814_v53 = vpop.permute.xlu1 %1021  ;;  %v3816_v50 = vpop.permute.xlu0 %1118 }
 0x1b5   : > { %5085 = vst [vmem:[#allocation16_spill] sm:$0xff] %v3816_v50  ;;  %v1200_v50 = vsel %vm1194_vm9, %v3429_v31, %v3573_v63 }
 0x1b6   : > { %965 = vrot.lane.b32.xlu1 %v865_v16, %s3184_s21  ;;  %1011 = vrot.lane.b32.xlu0 %v3807_v51, %s3188_s13  ;;  %v883_v51 = vrot.slane %v878_v39, 1  ;;  %v766_v39 = vshrl.u32 %v3767_v25, 16 }
 0x1b8   : > { %v3822_v10 = vpop.permute.xlu1 %1087  ;;  %v3824_v43 = vpop.permute.xlu0 %1182 }
 0x1b9   : > { %5086 = vst [vmem:[#allocation17_spill] sm:$0xff] %v3824_v43 }
 0x1ba   : > { %931 = vrot.lane.b32.xlu1 %v3529_v35, %s3183_s20  ;;  %1077 = vrot.lane.b32.xlu0 %v865_v16, %s3190_s15  ;;  %v1246_v35 = vsel %vm398_vm1, %v1200_v50, %v3714_v40 }
 0x1bb   : > { %v1279_v31 = vsel %vm1275_vm10, %v1246_v35, %v3611_v22  ;;  %v1224_v22 = vsel %vm1194_vm9, %v3443_v41, %v3602_v15  ;;  %v838_v41 = vor.u32 %v837_v49, %v766_v39  ;;  %v768_v15 = vrot.slane %v766_v39, 7 }
 0x1bc   : > { %v3830_v60 = vpop.permute.xlu1 %1042  ;;  %v3832_v33 = vpop.permute.xlu0 %975  ;;  %v1312_v50 = vsel %vm1308_vm11, %v1279_v31, %v3552_v47 }
 0x1bd   : > { %v1345_v47 = vsel %vm1341_vm12, %v1312_v50, %v3620_v29  ;;  %v1203_v29 = vsel %vm1194_vm9, %v3384_v57, %v3562_v54  ;;  %v771_v49 = vor.u32 %v769_v32, %v768_v15 }
 0x1be   : > { %933 = vrot.lane.b32.xlu1 %v3767_v25, %s3183_s20  ;;  %1186 = vrot.lane.b32.xlu0 %v3663_v9, %s3189_s14  ;;  %s3195_s20 = smov 64  }
 0x1c0   : > { %v3843_v16 = vpop.permute.xlu1 %915  ;;  %v3845_v43 = vpop.permute.xlu0 %1138 }
 0x1c1   : > { %5087 = vst [vmem:[#allocation18_spill] sm:$0xff] %v3843_v16  ;;  %v884_v16 = vor.u32 %v883_v51, %v875_v1 }
 0x1c2   : > { %1029 = vrot.lane.b32.xlu1 %v882_v19, %s3188_s13  ;;  %979 = vrot.lane.b32.xlu0 %v3663_v9, %s3184_s21  ;;  %v1262_v9 = vsel %vm398_vm1, %v1224_v22, %v3744_v13 }
 0x1c3   : > { %v886_v31 = vsel %vm3335_vm4, %v884_v16, 0  ;;  %v1248_v16 = vsel %vm398_vm1, %v1203_v29, %v3622_v30 }
 0x1c4   : > { %v3855_v63 = vpop.permute.xlu1 %1058  ;;  %v3857_v40 = vpop.permute.xlu0 %1154 }
 0x1c5   : > { %5088 = vst [vmem:[#allocation19_spill] sm:$0xff] %v3857_v40  ;;  %v1295_v40 = vsel %vm1275_vm10, %v1262_v9, %v3635_v38 }
 0x1c6   : > { %1062 = vrot.lane.b32.xlu1 %v3803_v44, %s3186_s8  ;;  %1060 = vrot.lane.b32.xlu0 %v3767_v25, %s3186_s8 }
 0x1c8   : > { %v1101_v35 = vpop.permute.xlu1 %1100  ;;  %v1165_v51 = vpop.permute.xlu0 %1164 }
 0x1c9   : > { %v1378_v1 = vsel %vm1374_vm13, %v1345_v47, %v1101_v35 }
 0x1ca   : > { %v1411_v25 = vsel %vm1407_vm14, %v1378_v1, %v3754_v6  ;;  %1095 = vrot.lane.b32.xlu1 %v886_v31, %s3190_s15  ;;  %1126 = vrot.lane.b32.xlu0 %v882_v19, %s3187_s9  ;;  %v873_v6 = vsel %vm3335_vm4, %v838_v41, 0  ;;  %v1328_v19 = vsel %vm1308_vm11, %v1295_v40, %v3571_v62  ;;  %v3905_v62 = vsel %vm3378_vm7, 0, %v771_v49 }
 0x1cb   : > { %v1444_v13 = vsel %vm1440_vm15, %v1411_v25, %v1165_v51  ;;  %v1361_v57 = vsel %vm1341_vm12, %v1328_v19, %v3645_v52  ;;  %v5089_v51 = vmov 0   ;;  %vm2085_vm4 = vcmask 1043459  }
 0x1cc   : > { %v958_v50 = vpop.permute.xlu1 %957  ;;  %v1004_v39 = vpop.permute.xlu0 %1003  ;;  %2938 = vmatmul.mubr.msk.bf16.vlgmr.msra.gmra.mxu1 %vm1500_vm0, %v1444_v13  ;;  %vm2094_vm7 = vcmask 1046534  }
 0x1cd   : > { %v1281_v38 = vsel %vm1275_vm10, %v1248_v16, %v1004_v39 }
 0x1ce   : > { %1128 = vrot.lane.b32.xlu1 %v3679_v2, %s3187_s9  ;;  %1188 = vrot.lane.b32.xlu0 %v873_v6, %s3189_s14  ;;  %v1314_v30 = vsel %vm1308_vm11, %v1281_v38, %v3763_v37 }
 0x1d0   : > { %v1117_v54 = vpop.permute.xlu1 %1116  ;;  %v1070_v22 = vpop.permute.xlu0 %1069 }
 0x1d1   : > { %v1394_v20 = vsel %vm1374_vm13, %v1361_v57, %v1117_v54  ;;  %v1347_v9 = vsel %vm1341_vm12, %v1314_v30, %v1070_v22 }
 0x1d2   : > { %v1380_v32 = vsel %vm1374_vm13, %v1347_v9, %v3783_v18  ;;  %1124 = vrot.lane.b32.xlu1 %v3905_v62, %s3187_s9  ;;  %1027 = vrot.lane.b32.xlu0 %v3905_v62, %s3188_s13  ;;  %v1427_v37 = vsel %vm1407_vm14, %v1394_v20, %v3769_v58  ;;  %v1230_v9 = vsel %vm1194_vm9, %v3566_v55, %v3781_v17  ;;  %s3197_s13 = smov 80  }
 0x1d3   : > { %v1413_v52 = vsel %vm1407_vm14, %v1380_v32, %v3675_v28  ;;  %v1227_v28 = vsel %vm1194_vm9, %v3401_v7, %v3584_v5 }
 0x1d4   : > { %v974_v2 = vpop.permute.xlu1 %973  ;;  %v1181_v40 = vpop.permute.xlu0 %1180  ;;  %v1446_v56 = vsel %vm1440_vm15, %v1413_v52, %v3795_v3  ;;  %v1264_v58 = vsel %vm398_vm1, %v1227_v28, %v3659_v8 }
 0x1d5   : > { %v3920_v35 = vsel %vm1440_vm15, %v1427_v37, %v1181_v40  ;;  %2941 = vmatprep.mubr.msk.bf16.mxu1 %vm1500_vm0, %v1446_v56 }
 0x1d6   : > { %981 = vrot.lane.b32.xlu1 %v873_v6, %s3184_s21  ;;  %1093 = vrot.lane.b32.xlu0 %v873_v6, %s3190_s15  ;;  %s3201_s15 = smov 120  }
 0x1d8   : > { %v1137_v18 = vpop.permute.xlu1 %1136  ;;  %v1020_v47 = vpop.permute.xlu0 %1019 }
 0x1d9   : > { %v1297_v3 = vsel %vm1275_vm10, %v1264_v58, %v1020_v47 }
 0x1da   : > { %1160 = vrot.lane.b32.xlu1 %v5089_v51, %s3185_s29  ;;  %1158 = vrot.lane.b32.xlu0 %v3803_v44, %s3185_s29  ;;  %v1330_v41 = vsel %vm1308_vm11, %v1297_v3, %v3771_v26  ;;  %s3196_s29 = smov 72  }
 0x1dc   : > { %v3935_v1 = vpop.permute.xlu1 %913  ;;  %v1086_v15 = vpop.permute.xlu0 %1085 }
 0x1dd   : > { %v3940_v7 = vsel %vm1341_vm12, %v1330_v41, %v1086_v15 }
 0x1de   : > { %1192 = vrot.lane.b32.xlu1 %v3341_v21, %s3189_s14  ;;  %1190 = vrot.lane.b32.xlu0 %v886_v31, %s3189_s14  ;;  %v1206_v21 = vsel %vm1194_vm9, %v3542_v42, %v3761_v36  ;;  %v1209_v42 = vsel %vm1194_vm9, %v3472_v59, %v3673_v27  ;;  %v1266_v36 = vsel %vm398_vm1, %v1230_v9, %v974_v2 }
 0x1df   : > { %v1250_v31 = vsel %vm398_vm1, %v1206_v21, %v958_v50  ;;  %v1252_v50 = vsel %vm398_vm1, %v1209_v42, %v3801_v14  ;;  %v1299_v55 = vsel %vm1275_vm10, %v1266_v36, %v3814_v53 }
 0x1e0   : > { %v1153_v5 = vpop.permute.xlu1 %1152  ;;  %v1041_v8 = vpop.permute.xlu0 %1040  ;;  %v1283_v54 = vsel %vm1275_vm10, %v1250_v31, %v3793_v45  ;;  %v1332_v40 = vsel %vm1308_vm11, %v1299_v55, %v3685_v34  ;;  %v1233_v34 = vsel %vm1194_vm9, %v3497_v11, %v3701_v61  ;;  %v5090_v55 = vld [vmem:[#allocation18_spill] sm:$0xff] }
 0x1e1   : > { %v1316_v20 = vsel %vm1308_vm11, %v1283_v54, %v3657_v4  ;;  %v1365_v28 = vsel %vm1341_vm12, %v1332_v40, %v3822_v10 }
 0x1e2   : > { %v1349_v45 = vsel %vm1341_vm12, %v1316_v20, %v3799_v23 }
 0x1e4   : > { %v930_v25 = vpop.permute.xlu1 %929  ;;  %v1057_v29 = vpop.permute.xlu0 %1056 }
 0x1e5   : > { %v1236_v10 = vsel %vm1194_vm9, %v3737_v48, %v930_v25 }
 0x1e8   : > { %v3945_v13 = vpop.permute.xlu1 %1009  ;;  %v1107_v44 = vpop.permute.xlu0 %1106 }
 0x1ec   : > { %v3947_v16 = vpop.permute.xlu1 %1075  ;;  %v1171_v39 = vpop.permute.xlu0 %1170 }
 0x1f0   : > { %v1026_v26 = vpop.permute.xlu1 %1025  ;;  %v3949_v38 = vpop.permute.xlu0 %963 }
 0x1f4   : > { %v1092_v6 = vpop.permute.xlu1 %1091  ;;  %v1123_v19 = vpop.permute.xlu0 %1122 }
 0x1f8   : > { %v3955_v49 = vpop.permute.xlu1 %1046  ;;  %v3957_v57 = vpop.permute.xlu0 %1142 }
 0x1fc   : > { %v920_v30 = vpop.permute.xlu1 %919  ;;  %v1169_v22 = vpop.permute.xlu0 %1168 }
 0x1fd   : > { %v1221_v36 = vsel %vm1194_vm9, %v3775_v46, %v920_v30 }
 0x200   : > { %v1105_v32 = vpop.permute.xlu1 %1104  ;;  %v1008_v52 = vpop.permute.xlu0 %1007 }
 0x201   : > { %v1382_v4 = vsel %vm1374_vm13, %v1349_v45, %v1105_v32  ;;  %v1285_v37 = vsel %vm1275_vm10, %v1252_v50, %v1008_v52 }
 0x202   : > { %v1415_v17 = vsel %vm1407_vm14, %v1382_v4, %v1137_v18  ;;  %v1318_v2 = vsel %vm1308_vm11, %v1285_v37, %v1041_v8 }
 0x203   : > { %v1448_v59 = vsel %vm1440_vm15, %v1415_v17, %v1169_v22  ;;  %v5091_v17 = vld [vmem:[#allocation7_spill] sm:$0xff] }
 0x204   : > { %v962_v27 = vpop.permute.xlu1 %961  ;;  %v1074_v14 = vpop.permute.xlu0 %1073  ;;  %2942 = vmatmul.mubr.msk.bf16.gmra.mxu1 %vm1500_vm0, %v1448_v59  ;;  %v1215_v59 = vsel %vm1194_vm9, %v5091_v17, %v5090_v55  ;;  %v5104_v55 = vld [vmem:[#allocation10_spill] sm:$0xff] }
 0x205   : > { %v1351_v23 = vsel %vm1341_vm12, %v1318_v2, %v1074_v14 }
 0x206   : > { %v1384_v56 = vsel %vm1374_vm13, %v1351_v23, %v1107_v44  ;;  %v5093_v23 = vld [vmem:[#allocation14_spill] sm:$0xff] }
 0x207   : > { %v1417_v53 = vsel %vm1407_vm14, %v1384_v56, %v3845_v43  ;;  %v1268_v43 = vsel %vm398_vm1, %v1233_v34, %v3832_v33  ;;  %v5094_v34 = vld [vmem:[#allocation8_spill] sm:$0xff] }
 0x208   : > { %v1121_v58 = vpop.permute.xlu1 %1120  ;;  %v3990_v18 = vpop.permute.xlu0 %1184  ;;  %v1450_v47 = vsel %vm1440_vm15, %v1417_v53, %v1171_v39 }
 0x209   : > { %v1398_v3 = vsel %vm1374_vm13, %v1365_v28, %v1121_v58  ;;  %2945 = vmatprep.mubr.msk.bf16.mxu1 %vm1500_vm0, %v1450_v47 }
 0x20a   : > { %v3996_v51 = vsel %vm1407_vm14, %v1398_v3, %v1153_v5 }
 0x20c   : > { %v978_v41 = vpop.permute.xlu1 %977  ;;  %v1024_v15 = vpop.permute.xlu0 %1023 }
 0x20d   : > { %v1270_v8 = vsel %vm398_vm1, %v1236_v10, %v978_v41  ;;  %v1301_v44 = vsel %vm1275_vm10, %v1268_v43, %v1024_v15  ;;  %v5095_v41 = vld [vmem:[#allocation12_spill] sm:$0xff] }
 0x20e   : > { %v1303_v39 = vsel %vm1275_vm10, %v1270_v8, %v1026_v26  ;;  %v1334_v11 = vsel %vm1308_vm11, %v1301_v44, %v1057_v29  ;;  %v1746_v26 = vld [vmem:[%s5061_s5] sm:$0x3]  ;;  %v5096_v44 = vld [vmem:[#allocation6_spill] sm:$0xff] }
 0x20f   : > { %v1336_v5 = vsel %vm1308_vm11, %v1303_v39, %v3855_v63  ;;  %3008 = vmatprep.subr.msk.bf16.mxu0 %vm1533_vm8, %v1746_v26  ;;  %v1803_v29 = vsel %vm1533_vm8, %v1746_v26, 0  ;;  %v5099_v26 = vld [vmem:[#allocation9_spill] sm:$0xff]  ;;  %vm2097_vm8 = vcmask 1047559  }
 0x210   : > { %v1141_v21 = vpop.permute.xlu1 %1140  ;;  %v1090_v61 = vpop.permute.xlu0 %1089  ;;  %v4012_v33 = vsel %vm1341_vm12, %v1336_v5, %v1092_v6  ;;  %2970 = vmatpush3.bf16.msra.mxu0 %v1803_v29  ;;  %v1212_v6 = vsel %vm1194_vm9, %v3706_v0, %v3935_v1  ;;  %v5097_v5 = vld [vmem:[#allocation5_spill] sm:$0xff] }
 0x211   : > { %v1367_v48 = vsel %vm1341_vm12, %v1334_v11, %v1090_v61 }
 0x212   : > { %v4016_v25 = vsel %vm1374_vm13, %v1367_v48, %v1123_v19  ;;  %v1254_v19 = vsel %vm398_vm1, %v1212_v6, %v962_v27  ;;  %v5092_v27 = vld [vmem:[#allocation15_spill] sm:$0xff] }
 0x213   : > { %v1287_v42 = vsel %vm1275_vm10, %v1254_v19, %v3945_v13 }
 0x214   : > { %v918_v31 = vpop.permute.xlu1 %917  ;;  %v1045_v54 = vpop.permute.xlu0 %1044  ;;  %v1320_v52 = vsel %vm1308_vm11, %v1287_v42, %v3830_v60 }
 0x215   : > { %v1353_v1 = vsel %vm1341_vm12, %v1320_v52, %v3947_v16  ;;  %v1218_v16 = vsel %vm1194_vm9, %v5092_v27, %v918_v31  ;;  %v5098_v31 = vld [vmem:[#allocation13_spill] sm:$0xff] }
 0x218   : > { %v4021_v22 = vpop.permute.xlu1 %1156  ;;  %v1111_v63 = vpop.permute.xlu0 %1110 }
 0x21c   : > { %v1014_v20 = vpop.permute.xlu1 %1013  ;;  %v1175_v9 = vpop.permute.xlu0 %1174 }
 0x220   : > { %v1080_v50 = vpop.permute.xlu1 %1079  ;;  %v968_v45 = vpop.permute.xlu0 %967 }
 0x221   : > { %v1260_v32 = vsel %vm398_vm1, %v1221_v36, %v968_v45 }
 0x222   : > { %v1293_v0 = vsel %vm1275_vm10, %v1260_v32, %v3746_v24  ;;  %v1256_v24 = vsel %vm398_vm1, %v1215_v59, %v3949_v38 }
 0x223   : > { %v1326_v46 = vsel %vm1308_vm11, %v1293_v0, %v3594_v12 }
 0x224   : > { %v1109_v4 = vpop.permute.xlu1 %1108  ;;  %v1173_v37 = vpop.permute.xlu0 %1172  ;;  %v1359_v12 = vsel %vm1341_vm12, %v1326_v46, %v5093_v23 }
 0x225   : > { %v1386_v13 = vsel %vm1374_vm13, %v1353_v1, %v1109_v4  ;;  %v1392_v43 = vsel %vm1374_vm13, %v1359_v12, %v5094_v34  ;;  %v5103_v4 = vld [vmem:[#allocation19_spill] sm:$0xff] }
 0x226   : > { %v1419_v30 = vsel %vm1407_vm14, %v1386_v13, %v1141_v21  ;;  %v1425_v21 = vsel %vm1407_vm14, %v1392_v43, %v5097_v5 }
 0x227   : > { %v1452_v60 = vsel %vm1440_vm15, %v1419_v30, %v1173_v37  ;;  %v1433_v37 = vsel %vm1407_vm14, %v4016_v25, %v5103_v4 }
 0x228   : > { %v966_v2 = vpop.permute.xlu1 %965  ;;  %v1012_v14 = vpop.permute.xlu0 %1011  ;;  %2946 = vmatmul.mubr.msk.bf16.gmra.mxu1 %vm1500_vm0, %v1452_v60 }
 0x229   : > { %v1258_v40 = vsel %vm398_vm1, %v1218_v16, %v966_v2  ;;  %v1289_v56 = vsel %vm1275_vm10, %v1256_v24, %v1012_v14 }
 0x22a   : > { %v1291_v53 = vsel %vm1275_vm10, %v1258_v40, %v1014_v20  ;;  %v1322_v47 = vsel %vm1308_vm11, %v1289_v56, %v1045_v54  ;;  %v5101_v20 = vld [vmem:[#allocation11_spill] sm:$0xff] }
 0x22b   : > { %v1324_v28 = vsel %vm1308_vm11, %v1291_v53, %v3955_v49 }
 0x22c   : > { %v1357_v38 = vsel %vm1341_vm12, %v1324_v28, %v1080_v50  ;;  %v932_v58 = vpop.permute.xlu1 %931  ;;  %v1078_v3 = vpop.permute.xlu0 %1077  ;;  %v5102_v50 = vld [vmem:[#allocation17_spill] sm:$0xff] }
 0x22d   : > { %v1355_v10 = vsel %vm1341_vm12, %v1322_v47, %v1078_v3  ;;  %v1390_v15 = vsel %vm1374_vm13, %v1357_v38, %v5095_v41  ;;  %v1239_v17 = vsel %vm1194_vm9, %v5104_v55, %v932_v58 }
 0x22e   : > { %v1388_v8 = vsel %vm1374_vm13, %v1355_v10, %v1111_v63  ;;  %v1423_v39 = vsel %vm1407_vm14, %v1390_v15, %v5096_v44  ;;  %v1458_v63 = vsel %vm1440_vm15, %v1425_v21, %v5099_v26  ;;  %v4130_v10 = vld [vmem:[%s5060_s4] ss:$0 sm:$0xff] }
 0x22f   : > { %v1421_v49 = vsel %vm1407_vm14, %v1388_v8, %v3957_v57  ;;  %v1456_v54 = vsel %vm1440_vm15, %v1423_v39, %v5098_v31  ;;  %v5100_v57 = vld [vmem:[#allocation16_spill] sm:$0xff] }
 0x230   : > { %v934_v11 = vpop.permute.xlu1 %933  ;;  %v1187_v61 = vpop.permute.xlu0 %1186  ;;  %v1454_v48 = vsel %vm1440_vm15, %v1421_v49, %v1175_v9  ;;  %v1396_v29 = vsel %vm1374_vm13, %v3940_v7, %v5100_v57  ;;  %v1464_v7 = vsel %vm1440_vm15, %v3996_v51, %v3990_v18 }
 0x231   : > { %2949 = vmatprep.mubr.msk.bf16.mxu1 %vm1500_vm0, %v1454_v48  ;;  %v1429_v9 = vsel %vm1407_vm14, %v1396_v29, %v5101_v20  ;;  %v1466_v13 = vsel %vm1440_vm15, %v1433_v37, %v1187_v61  ;;  %v1242_v25 = vsel %vm1194_vm9, %v3905_v62, %v934_v11 }
 0x232   : > { %2950 = vmatmul.mubr.msk.bf16.gmra.mxu1 %vm1500_vm0, %v1456_v54  ;;  %v1462_v45 = vsel %vm1440_vm15, %v1429_v9, %v5102_v50 }
 0x233   : > { %2953 = vmatprep.mubr.msk.bf16.mxu1 %vm1500_vm0, %v1458_v63 }
 0x234   : > { %v1030_v6 = vpop.permute.xlu1 %1029  ;;  %v980_v19 = vpop.permute.xlu0 %979 }
 0x235   : > { %v1272_v51 = vsel %vm398_vm1, %v1239_v17, %v980_v19 }
 0x238   : > { %v1063_v42 = vpop.permute.xlu1 %1062  ;;  %v1061_v36 = vpop.permute.xlu0 %1060 }
 0x23a   : > { %2954 = vmatmul.mubr.msk.bf16.gmra.mxu1 %vm1500_vm0, %v3920_v35 }
 0x23b   : > { %2957 = vmatprep.mubr.msk.bf16.mxu1 %vm1500_vm0, %v1462_v45 }
 0x23c   : > { %v1096_v32 = vpop.permute.xlu1 %1095  ;;  %v1127_v52 = vpop.permute.xlu0 %1126 }
 0x240   : > { %v1129_v0 = vpop.permute.xlu1 %1128  ;;  %v1189_v1 = vpop.permute.xlu0 %1188 }
 0x242   : > { %2958 = vmatmul.mubr.msk.bf16.gmra.mxu1 %vm1500_vm0, %v1464_v7 }
 0x243   : > { %2961 = vmatprep.mubr.msk.bf16.mxu1 %vm1500_vm0, %v1466_v13 }
 0x244   : > { %v1125_v35 = vpop.permute.xlu1 %1124  ;;  %v1028_v46 = vpop.permute.xlu0 %1027 }
 0x245   : > { %v1402_v30 = vsel %vm1374_vm13, %v4012_v33, %v1125_v35  ;;  %v1305_v59 = vsel %vm1275_vm10, %v1272_v51, %v1028_v46 }
 0x246   : > { %v1435_v18 = vsel %vm1407_vm14, %v1402_v30, %v4021_v22  ;;  %v1338_v22 = vsel %vm1308_vm11, %v1305_v59, %v1061_v36 }
 0x247   : > { %v1468_v16 = vsel %vm1440_vm15, %v1435_v18, %v1189_v1 }
 0x248   : > { %v982_v60 = vpop.permute.xlu1 %981  ;;  %v1094_v24 = vpop.permute.xlu0 %1093 }
 0x249   : > { %v1274_v27 = vsel %vm398_vm1, %v1242_v25, %v982_v60  ;;  %v1371_v14 = vsel %vm1341_vm12, %v1338_v22, %v1094_v24 }
 0x24a   : > { %v1307_v33 = vsel %vm1275_vm10, %v1274_v27, %v1030_v6  ;;  %2962 = vmatmul.mubr.msk.bf16.gmra.mxu1 %vm1500_vm0, %v1468_v16  ;;  %v1404_v56 = vsel %vm1374_vm13, %v1371_v14, %v1127_v52  ;;  %vm2652_vm10 = vcmask 392192  }
 0x24b   : > { %v1340_v2 = vsel %vm1308_vm11, %v1307_v33, %v1063_v42 }
 0x24c   : > { %v1373_v62 = vsel %vm1341_vm12, %v1340_v2, %v1096_v32  ;;  %v1161_v23 = vpop.permute.xlu1 %1160  ;;  %v1159_v12 = vpop.permute.xlu0 %1158  ;;  %vm2655_vm12 = vcmask 457728  }
 0x24d   : > { %v1406_v40 = vsel %vm1374_vm13, %v1373_v62, %v1129_v0  ;;  %v1437_v28 = vsel %vm1407_vm14, %v1404_v56, %v1159_v12 }
 0x24e   : > { %v1439_v53 = vsel %vm1407_vm14, %v1406_v40, %v1161_v23  ;;  %vm2658_vm14 = vcmask 523264  }
 0x250   : > { %v1193_v38 = vpop.permute.xlu1 %1192  ;;  %v1191_v58 = vpop.permute.xlu0 %1190 }
 0x251   : > { %v1472_v47 = vsel %vm1440_vm15, %v1439_v53, %v1193_v38  ;;  %v1470_v3 = vsel %vm1440_vm15, %v1437_v28, %v1191_v58 }
 0x252   : > { %2965 = vmatprep.mubr.msk.bf16.mxu1 %vm1500_vm0, %v1470_v3 }
 0x253   : > { %2966 = vmatmul.mubr.msk.bf16.gmra.mxu1 %vm1500_vm0, %v1472_v47  ;;  %vm2661_vm0 = vcmask 588800  }
 0x28c   : > { %v2939_v34 = vpop.f32.mrf.mxu1 }
 0x28d   : > { %v1580_v44 = vadd.f32 %v2939_v34, %v4130_v10 }
 0x28e   : > { %v1571_v43 = vpop.f32.mrf.mxu1 }
 0x28f   : > { %v1572_v15 = vadd.f32 %v4130_v10, %v1571_v43  ;;  %v1700_v61 = vmax.f32 %v1580_v44, 0.0 }
 0x290   : > { %v2940_v41 = vpop.f32.mrf.mxu1 }
 0x291   : > { %v1583_v8 = vadd.f32 %v2940_v41, %v4130_v10  ;;  %v1698_v21 = vmax.f32 %v1572_v15, 0.0 }
 0x292   : > { %v1574_v39 = vpop.f32.mrf.mxu1 }
 0x293   : > { %v1575_v49 = vadd.f32 %v4130_v10, %v1574_v39  ;;  %v1701_v5 = vmax.f32 %v1583_v8, 0.0 }
 0x295   : > { %v1699_v11 = vmax.f32 %v1575_v49, 0.0  ;;  %v1731_v31 = vpack.c.bf16 %v1701_v5, %v1700_v61 }
 0x297   : > { %v1730_v48 = vpack.c.bf16 %v1699_v11, %v1698_v21 }
 0x299   : > { %2971 = vmatprep.mubr.msk.bf16.mxu0 %vm1194_vm9, %v1730_v48 }
 0x29a   : > { %2972 = vmatmul.mubr.msk.bf16.vlgmr.msra.gmra.mxu0 %vm1194_vm9, %v1731_v31 }
 0x2c4   : > { %v2943_v54 = vpop.f32.mrf.mxu1 }
 0x2c5   : > { %v1596_v6 = vadd.f32 %v2943_v54, %v4130_v10 }
 0x2c6   : > { %v1587_v26 = vpop.f32.mrf.mxu1 }
 0x2c7   : > { %v1588_v57 = vadd.f32 %v4130_v10, %v1587_v26  ;;  %v1704_v50 = vmax.f32 %v1596_v6, 0.0 }
 0x2c8   : > { %v2944_v63 = vpop.f32.mrf.mxu1 }
 0x2c9   : > { %v1599_v29 = vadd.f32 %v2944_v63, %v4130_v10  ;;  %v1702_v42 = vmax.f32 %v1588_v57, 0.0 }
 0x2ca   : > { %v1590_v19 = vpop.f32.mrf.mxu1 }
 0x2cb   : > { %v1591_v20 = vadd.f32 %v4130_v10, %v1590_v19  ;;  %v1705_v9 = vmax.f32 %v1599_v29, 0.0 }
 0x2cd   : > { %v1703_v36 = vmax.f32 %v1591_v20, 0.0  ;;  %v1733_v32 = vpack.c.bf16 %v1705_v9, %v1704_v50 }
 0x2cf   : > { %v1732_v45 = vpack.c.bf16 %v1703_v36, %v1702_v42 }
 0x2d1   : > { %2975 = vmatprep.mubr.msk.bf16.mxu0 %vm1194_vm9, %v1732_v45 }
 0x2d2   : > { %2976 = vmatmul.mubr.msk.bf16.gmra.mxu0 %vm1194_vm9, %v1733_v32 }
 0x2e8   : > { %v2947_v52 = vpop.f32.mrf.mxu1 }
 0x2e9   : > { %v1612_v37 = vadd.f32 %v2947_v52, %v4130_v10 }
 0x2ea   : > { %v1603_v0 = vpop.f32.mrf.mxu1 }
 0x2eb   : > { %v1604_v7 = vadd.f32 %v4130_v10, %v1603_v0  ;;  %v1708_v17 = vmax.f32 %v1612_v37, 0.0 }
 0x2ec   : > { %v2948_v1 = vpop.f32.mrf.mxu1 }
 0x2ed   : > { %v1615_v4 = vadd.f32 %v2948_v1, %v4130_v10  ;;  %v1706_v30 = vmax.f32 %v1604_v7, 0.0 }
 0x2ee   : > { %v1606_v13 = vpop.f32.mrf.mxu1 }
 0x2ef   : > { %v1607_v35 = vadd.f32 %v4130_v10, %v1606_v13  ;;  %v1709_v46 = vmax.f32 %v1615_v4, 0.0 }
 0x2f1   : > { %v1707_v55 = vmax.f32 %v1607_v35, 0.0  ;;  %v1735_v25 = vpack.c.bf16 %v1709_v46, %v1708_v17 }
 0x2f2   : > { %v2951_v18 = vpop.f32.mrf.mxu1 }
 0x2f3   : > { %v1734_v51 = vpack.c.bf16 %v1707_v55, %v1706_v30  ;;  %v1628_v16 = vadd.f32 %v2951_v18, %v4130_v10 }
 0x2f4   : > { %v1619_v59 = vpop.f32.mrf.mxu1 }
 0x2f5   : > { %2979 = vmatprep.mubr.msk.bf16.mxu0 %vm1194_vm9, %v1734_v51  ;;  %v1620_v24 = vadd.f32 %v4130_v10, %v1619_v59  ;;  %v1712_v12 = vmax.f32 %v1628_v16, 0.0 }
 0x2f6   : > { %v2952_v60 = vpop.f32.mrf.mxu1  ;;  %2980 = vmatmul.mubr.msk.bf16.gmra.mxu0 %vm1194_vm9, %v1735_v25 }
 0x2f7   : > { %v1631_v27 = vadd.f32 %v2952_v60, %v4130_v10  ;;  %v1710_v62 = vmax.f32 %v1620_v24, 0.0 }
 0x2f8   : > { %v1622_v33 = vpop.f32.mrf.mxu1 }
 0x2f9   : > { %v1623_v2 = vadd.f32 %v4130_v10, %v1622_v33  ;;  %v1713_v22 = vmax.f32 %v1631_v27, 0.0 }
 0x2fa   : > { %v2955_v14 = vpop.f32.mrf.mxu1 }
 0x2fb   : > { %v1711_v23 = vmax.f32 %v1623_v2, 0.0  ;;  %v1737_v53 = vpack.c.bf16 %v1713_v22, %v1712_v12  ;;  %v1644_v47 = vadd.f32 %v2955_v14, %v4130_v10  ;;  %v4183_v22 = vld [vmem:[%s5062_s6] ss:$0 sm:$0xff] }
 0x2fc   : > { %v1635_v40 = vpop.f32.mrf.mxu1  ;;  %v3105_v12 = vld [vmem:[%s3300_s19] sm:$0xff]  }
 0x2fd   : > { %v1736_v56 = vpack.c.bf16 %v1711_v23, %v1710_v62  ;;  %v1636_v38 = vadd.f32 %v4130_v10, %v1635_v40  ;;  %v1716_v44 = vmax.f32 %v1644_v47, 0.0  ;;  %v1966_v40 = vunpack.c.l.bf16 %v3105_v12 }
 0x2fe   : > { %v2956_v28 = vpop.f32.mrf.mxu1 }
 0x2ff   : > { %v1647_v58 = vadd.f32 %v2956_v28, %v4130_v10  ;;  %2983 = vmatprep.mubr.msk.bf16.mxu0 %vm1194_vm9, %v1736_v56  ;;  %v1714_v15 = vmax.f32 %v1636_v38, 0.0 }
 0x300   : > { %v1638_v3 = vpop.f32.mrf.mxu1  ;;  %2984 = vmatmul.mubr.msk.bf16.gmra.mxu0 %vm1194_vm9, %v1737_v53 }
 0x301   : > { %v1639_v34 = vadd.f32 %v4130_v10, %v1638_v3  ;;  %v1717_v43 = vmax.f32 %v1647_v58, 0.0 }
 0x302   : > { %v2959_v41 = vpop.f32.mrf.mxu1 }
 0x303   : > { %v1715_v8 = vmax.f32 %v1639_v34, 0.0  ;;  %v1739_v5 = vpack.c.bf16 %v1717_v43, %v1716_v44  ;;  %v1660_v48 = vadd.f32 %v2959_v41, %v4130_v10 }
 0x304   : > { %v1651_v39 = vpop.f32.mrf.mxu1 }
 0x305   : > { %v1738_v49 = vpack.c.bf16 %v1715_v8, %v1714_v15  ;;  %v1652_v11 = vadd.f32 %v4130_v10, %v1651_v39  ;;  %v1720_v6 = vmax.f32 %v1660_v48, 0.0  ;;  %v1967_v15 = vunpack.c.h.bf16 %v3105_v12  ;;  %v4199_v8 = vld [vmem:[%s3300_s19 + $0x40] sm:$0xff]  }
 0x306   : > { %v2960_v21 = vpop.f32.mrf.mxu1  ;;  %v1982_v44 = vunpack.c.l.bf16 %v4199_v8  ;;  %v1983_v39 = vunpack.c.h.bf16 %v4199_v8 }
 0x307   : > { %v1663_v61 = vadd.f32 %v2960_v21, %v4130_v10  ;;  %2987 = vmatprep.mubr.msk.bf16.mxu0 %vm1194_vm9, %v1738_v49  ;;  %v1718_v57 = vmax.f32 %v1652_v11, 0.0  ;;  %v4205_v21 = vld [vmem:[%s3300_s19 + $0x18] sm:$0xff]  }
 0x308   : > { %v1654_v31 = vpop.f32.mrf.mxu1  ;;  %2988 = vmatmul.mubr.msk.bf16.gmra.mxu0 %vm1194_vm9, %v1739_v5  ;;  %v1972_v11 = vunpack.c.l.bf16 %v4205_v21 }
 0x309   : > { %v1655_v54 = vadd.f32 %v4130_v10, %v1654_v31  ;;  %v1721_v26 = vmax.f32 %v1663_v61, 0.0  ;;  %v4209_v61 = vld [vmem:[%s3300_s19 + $0x10] sm:$0xff]  }
 0x30a   : > { %v2963_v63 = vpop.f32.mrf.mxu1  ;;  %v1970_v48 = vunpack.c.l.bf16 %v4209_v61 }
 0x30b   : > { %v1719_v29 = vmax.f32 %v1655_v54, 0.0  ;;  %v1741_v9 = vpack.c.bf16 %v1721_v26, %v1720_v6  ;;  %v1676_v45 = vadd.f32 %v2963_v63, %v4130_v10  ;;  %v1973_v26 = vunpack.c.h.bf16 %v4205_v21  ;;  %v4220_v6 = vld [vmem:[%s3300_s19 + $0x20] sm:$0xff]  }
 0x30c   : > { %v1667_v19 = vpop.f32.mrf.mxu1  ;;  %v1971_v63 = vunpack.c.h.bf16 %v4209_v61 }
 0x30d   : > { %v1740_v20 = vpack.c.bf16 %v1719_v29, %v1718_v57  ;;  %v1668_v36 = vadd.f32 %v4130_v10, %v1667_v19  ;;  %v1724_v37 = vmax.f32 %v1676_v45, 0.0  ;;  %v4216_v57 = vld [vmem:[%s3300_s19 + $0x28] sm:$0xff]   ;;  %v1974_v19 = vunpack.c.l.bf16 %v4220_v6 }
 0x30e   : > { %v2964_v42 = vpop.f32.mrf.mxu1  ;;  %v1976_v29 = vunpack.c.l.bf16 %v4216_v57 }
 0x30f   : > { %v1679_v50 = vadd.f32 %v2964_v42, %v4130_v10  ;;  %2991 = vmatprep.mubr.msk.bf16.mxu0 %vm1194_vm9, %v1740_v20  ;;  %v1722_v1 = vmax.f32 %v1668_v36, 0.0  ;;  %v1977_v20 = vunpack.c.h.bf16 %v4216_v57  ;;  %v4226_v42 = vld [vmem:[%s3300_s19 + $0x38] sm:$0xff]  }
 0x310   : > { %v1670_v32 = vpop.f32.mrf.mxu1  ;;  %2992 = vmatmul.mubr.msk.bf16.gmra.mxu0 %vm1194_vm9, %v1741_v9  ;;  %v1975_v9 = vunpack.c.h.bf16 %v4220_v6  ;;  %v1980_v36 = vunpack.c.l.bf16 %v4226_v42 }
 0x311   : > { %v1671_v52 = vadd.f32 %v4130_v10, %v1670_v32  ;;  %v1725_v0 = vmax.f32 %v1679_v50, 0.0  ;;  %v4230_v50 = vld [vmem:[%s3300_s19 + $0x30] sm:$0xff]   ;;  %v1981_v32 = vunpack.c.h.bf16 %v4226_v42 }
 0x312   : > { %v1978_v45 = vunpack.c.l.bf16 %v4230_v50 }
 0x313   : > { %v1723_v7 = vmax.f32 %v1671_v52, 0.0  ;;  %v2967_v4 = vpop.f32.mrf.mxu1  ;;  %v1743_v46 = vpack.c.bf16 %v1725_v0, %v1724_v37  ;;  %v1979_v52 = vunpack.c.h.bf16 %v4230_v50  ;;  %v4236_v0 = vld [vmem:[%s3300_s19 + $0x48] sm:$0xff]  }
 0x314   : > { %v1692_v18 = vadd.f32 %v2967_v4, %v4130_v10  ;;  %v1985_v37 = vunpack.c.h.bf16 %v4236_v0 }
 0x315   : > { %v1742_v13 = vpack.c.bf16 %v1723_v7, %v1722_v1  ;;  %v1683_v35 = vpop.f32.mrf.mxu1  ;;  %v1984_v1 = vunpack.c.l.bf16 %v4236_v0 }
 0x316   : > { %v1684_v55 = vadd.f32 %v4130_v10, %v1683_v35  ;;  %v1728_v27 = vmax.f32 %v1692_v18, 0.0 }
 0x317   : > { %v2968_v30 = vpop.f32.mrf.mxu1  ;;  %2995 = vmatprep.mubr.msk.bf16.mxu0 %vm1194_vm9, %v1742_v13  ;;  %v4242_v13 = vld [vmem:[%s3300_s19 + $0x58] sm:$0xff]  }
 0x318   : > { %v1695_v17 = vadd.f32 %v2968_v30, %v4130_v10  ;;  %2996 = vmatmul.mubr.msk.bf16.gmra.mxu0 %vm1194_vm9, %v1743_v46  ;;  %v1726_v60 = vmax.f32 %v1684_v55, 0.0  ;;  %v4247_v55 = vld [vmem:[%s3300_s19 + $0x50] sm:$0xff]   ;;  %v5105_v8 = vunpack.c.l.bf16 %v4242_v13 }
 0x319   : > { %v1686_v51 = vpop.f32.mrf.mxu1 }
 0x31a   : > { %v1687_v25 = vadd.f32 %v4130_v10, %v1686_v51  ;;  %v1729_v59 = vmax.f32 %v1695_v17, 0.0  ;;  %v3104_v10 = vld [vmem:[%s3300_s19 + $0x8] sm:$0xff]  }
 0x31b   : > { %v1968_v23 = vunpack.c.l.bf16 %v3104_v10  ;;  %v1969_v49 = vunpack.c.h.bf16 %v3104_v10 }
 0x31c   : > { %v1727_v24 = vmax.f32 %v1687_v25, 0.0  ;;  %v1745_v33 = vpack.c.bf16 %v1729_v59, %v1728_v27  ;;  %v4254_v59 = vld [vmem:[%s3300_s19 + $0x68] sm:$0xff]  }
 0x31e   : > { %v1744_v16 = vpack.c.bf16 %v1727_v24, %v1726_v60  ;;  %v4258_v24 = vld [vmem:[%s3300_s19 + $0x60] sm:$0xff]  }
 0x320   : > { %2999 = vmatprep.mubr.msk.bf16.mxu0 %vm1194_vm9, %v1744_v16 }
 0x321   : > { %3000 = vmatmul.mubr.msk.bf16.gmra.mxu0 %vm1194_vm9, %v1745_v33  ;;  %vm2649_vm9 = vcmask 326656  }
 0x35a   : > { %v2973_v2 = vpop.f32.mrf.mxu0 }
 0x35b   : > { %v1848_v62 = vadd.f32 %v2973_v2, %v4183_v22 }
 0x35c   : > { %v1839_v14 = vpop.f32.mrf.mxu0 }
 0x35d   : > { %v1840_v56 = vadd.f32 %v4183_v22, %v1839_v14  ;;  %v2000_v53 = vadd.f32 %v1968_v23, %v1848_v62 }
 0x35e   : > { %v2974_v34 = vpop.f32.mrf.mxu0 }
 0x35f   : > { %v1998_v28 = vadd.f32 %v1966_v40, %v1840_v56  ;;  %v4189_v38 = vmax.f32 %v2000_v53, 0.0  ;;  %v1851_v31 = vadd.f32 %v2974_v34, %v4183_v22 }
 0x360   : > { %v1842_v43 = vpop.f32.mrf.mxu0 }
 0x361   : > { %v4191_v58 = vmax.f32 %v1998_v28, 0.0  ;;  %v2078_v47 = vrot.slane %v4189_v38, 7  ;;  %v1843_v5 = vadd.f32 %v4183_v22, %v1842_v43  ;;  %v2001_v46 = vadd.f32 %v1969_v49, %v1851_v31 }
 0x362   : > { %v2286_v33 = vrot.slane %v4189_v38, 5  ;;  %v2150_v28 = vrot.slane %v4189_v38, 1  ;;  %v2218_v43 = vrot.slane %v4189_v38, 3 }
 0x363   : > { %v4196_v3 = vsel %vm2079_vm2, %v2078_v47, %v4191_v58  ;;  %v1999_v7 = vadd.f32 %v1967_v15, %v1843_v5  ;;  %v2285_v51 = vrot.slane %v4191_v58, 6  ;;  %v2115_v2 = vrot.slane %v4191_v58, 1 }
 0x364   : > { %v2149_v14 = vrot.slane %v4191_v58, 2  ;;  %v2183_v12 = vrot.slane %v4191_v58, 3  ;;  %v2217_v40 = vrot.slane %v4191_v58, 4  ;;  %v4269_v56 = vmax.f32 %v2001_v46, 0.0 }
 0x365   : > { %v4265_v10 = vmax.f32 %v1999_v7, 0.0  ;;  %v2184_v47 = vrot.slane %v4189_v38, 2  ;;  %v2287_v34 = vsel %vm2079_vm2, %v2286_v33, %v2285_v51  ;;  %v2251_v15 = vrot.slane %v4191_v58, 5 }
 0x366   : > { %v2116_v5 = vsel %vm2079_vm2, %v4189_v38, %v2115_v2  ;;  %v2319_v31 = vrot.slane %v4191_v58, 7  ;;  %v2320_v51 = vrot.slane %v4189_v38, 6  ;;  %v2369_v33 = vrot.slane %v4269_v56, 7 }
 0x367   : > { %v2185_v7 = vsel %vm2079_vm2, %v2184_v47, %v2183_v12  ;;  %v2573_v46 = vrot.slane %v4265_v10, 6  ;;  %v2403_v2 = vrot.slane %v4265_v10, 1  ;;  %v2539_v62 = vrot.slane %v4265_v10, 5 }
 0x392   : > { %v2977_v41 = vpop.f32.mrf.mxu0 }
 0x393   : > { %v1864_v30 = vadd.f32 %v2977_v41, %v4183_v22  ;;  %v2370_v41 = vsel %vm2079_vm2, %v2369_v33, %v4265_v10 }
 0x394   : > { %v1855_v54 = vpop.f32.mrf.mxu0 }
 0x395   : > { %v1856_v4 = vadd.f32 %v4183_v22, %v1855_v54  ;;  %v2004_v53 = vadd.f32 %v1972_v11, %v1864_v30  ;;  %v2151_v11 = vsel %vm2079_vm2, %v2150_v28, %v2149_v14  ;;  %v4300_v28 = vld [vmem:[%s3300_s19 + $0x70] sm:$0xff]  }
 0x396   : > { %v2978_v16 = vpop.f32.mrf.mxu0 }
 0x397   : > { %v2002_v23 = vadd.f32 %v1970_v48, %v1856_v4  ;;  %v2252_v48 = vrot.slane %v4189_v38, 4  ;;  %v2219_v4 = vsel %vm2079_vm2, %v2218_v43, %v2217_v40  ;;  %v4287_v30 = vmax.f32 %v2004_v53, 0.0 }
 0x398   : > { %v1858_v49 = vpop.f32.mrf.mxu0  ;;  %v2574_v40 = vrot.slane %v4269_v56, 5  ;;  %v2321_v38 = vsel %vm2079_vm2, %v2320_v51, %v2319_v31  ;;  %v2437_v43 = vrot.slane %v4265_v10, 2  ;;  %v4314_v53 = vsel %vm2079_vm2, %v4269_v56, %v2403_v2 }
 0x399   : > { %v4282_v54 = vmax.f32 %v2002_v23, 0.0  ;;  %v1859_v14 = vadd.f32 %v4183_v22, %v1858_v49  ;;  %v2253_v58 = vsel %vm2079_vm2, %v2252_v48, %v2251_v15  ;;  %v4295_v23 = vld [vmem:[%s3300_s19 + $0x78] sm:$0xff]   ;;  %v2438_v48 = vrot.slane %v4269_v56, 1  ;;  %s3191_s19 = smov 48  }
 0x39a   : > { %v2575_v15 = vsel %vm2079_vm2, %v2574_v40, %v2573_v46  ;;  %v2471_v31 = vrot.slane %v4265_v10, 3  ;;  %v2084_v51 = vrot.slane %v4287_v30, 5  ;;  %v2472_v46 = vrot.slane %v4269_v56, 2 }
 0x39b   : > { %v2081_v12 = vrot.slane %v4282_v54, 6  ;;  %v2003_v49 = vadd.f32 %v1971_v63, %v1859_v14  ;;  %v2505_v40 = vrot.slane %v4265_v10, 4  ;;  %v1867_v33 = vadd.f32 %v2978_v16, %v4183_v22 }
 0x39c   : > { %v2607_v2 = vrot.slane %v4265_v10, 7  ;;  %v2288_v60 = vrot.slane %v4282_v54, 4  ;;  %v2439_v61 = vsel %vm2079_vm2, %v2438_v48, %v2437_v43  ;;  %v2506_v63 = vrot.slane %v4269_v56, 3 }
 0x39d   : > { %v2083_v47 = vsel %vm2082_vm3, %v2081_v12, %v4196_v3  ;;  %v2540_v14 = vrot.slane %v4269_v56, 4  ;;  %v2117_v25 = vrot.slane %v4282_v54, 7  ;;  %v2186_v3 = vrot.slane %v4282_v54, 1 }
 0x39e   : > { %v4328_v27 = vsel %vm2085_vm4, %v2084_v51, %v2083_v47  ;;  %v2473_v16 = vsel %vm2079_vm2, %v2472_v46, %v2471_v31  ;;  %v2608_v12 = vrot.slane %v4269_v56, 6  ;;  %v2035_v10 = vmax.f32 %v2003_v49, 0.0 }
 0x39f   : > { %v2220_v47 = vrot.slane %v4282_v54, 2  ;;  %v2254_v51 = vrot.slane %v4282_v54, 3  ;;  %v2507_v18 = vsel %vm2079_vm2, %v2506_v63, %v2505_v40  ;;  %v2005_v43 = vadd.f32 %v1973_v26, %v1867_v33 }
 0x3a0   : > { %v2153_v48 = vrot.slane %v4287_v30, 7  ;;  %v2541_v17 = vsel %vm2079_vm2, %v2540_v14, %v2539_v62  ;;  %v2609_v35 = vsel %vm2079_vm2, %v2608_v12, %v2607_v2  ;;  %v2289_v31 = vsel %vm2082_vm3, %v2288_v60, %v2287_v34 }
 0x3a1   : > { %v2290_v56 = vrot.slane %v4287_v30, 3  ;;  %v2152_v49 = vsel %vm2082_vm3, %v4282_v54, %v2151_v11  ;;  %v2322_v46 = vrot.slane %v4282_v54, 5  ;;  %v2118_v40 = vsel %vm2082_vm3, %v2117_v25, %v2116_v5 }
 0x3a2   : > { %v2119_v21 = vrot.slane %v4287_v30, 6  ;;  %v2187_v26 = vsel %vm2082_vm3, %v2186_v3, %v2185_v7  ;;  %v2222_v33 = vrot.slane %v4287_v30, 1  ;;  %v2221_v62 = vsel %vm2082_vm3, %v2220_v47, %v2219_v4 }
 0x3a3   : > { %v2255_v2 = vsel %vm2082_vm3, %v2254_v51, %v2253_v58  ;;  %v2576_v60 = vrot.slane %v2035_v10, 4  ;;  %v2371_v34 = vrot.slane %v2035_v10, 6  ;;  %v2037_v63 = vmax.f32 %v2005_v43, 0.0 }
 0x3a4   : > { %v4358_v14 = vsel %vm2085_vm4, %v2290_v56, %v2289_v31  ;;  %v4361_v11 = vsel %vm2085_vm4, %v2153_v48, %v2152_v49  ;;  %v2256_v25 = vrot.slane %v4287_v30, 2  ;;  %v4365_v5 = vsel %vm2085_vm4, %v2119_v21, %v2118_v40 }
 0x3a5   : > { %v4369_v54 = vsel %vm2085_vm4, %v4287_v30, %v2187_v26  ;;  %v2323_v7 = vsel %vm2082_vm3, %v2322_v46, %v2321_v38  ;;  %v2405_v4 = vrot.slane %v2035_v10, 7  ;;  %v4373_v58 = vsel %vm2085_vm4, %v2222_v33, %v2221_v62 }
 0x3a6   : > { %v4376_v3 = vsel %vm2085_vm4, %v2256_v25, %v2255_v2  ;;  %v2324_v12 = vrot.slane %v4287_v30, 4  ;;  %v2474_v47 = vrot.slane %v2035_v10, 1  ;;  %v2577_v51 = vsel %vm2082_vm3, %v2576_v60, %v2575_v15 }
 0x3a7   : > { %v2372_v43 = vsel %vm2082_vm3, %v2371_v34, %v2370_v41  ;;  %v2508_v48 = vrot.slane %v2035_v10, 2  ;;  %v2542_v31 = vrot.slane %v2035_v10, 3  ;;  %v2578_v49 = vrot.slane %v2037_v63, 3 }
 0x3a8   : > { %v4382_v38 = vsel %vm2085_vm4, %v2324_v12, %v2323_v7  ;;  %v2373_v46 = vrot.slane %v2037_v63, 5  ;;  %v2610_v40 = vrot.slane %v2035_v10, 5  ;;  %v2406_v30 = vsel %vm2082_vm3, %v2405_v4, %v4314_v53 }
 0x3a9   : > { %v2407_v26 = vrot.slane %v2037_v63, 6  ;;  %v2440_v15 = vsel %vm2082_vm3, %v2035_v10, %v2439_v61  ;;  %v4389_v41 = vsel %vm2085_vm4, %v2578_v49, %v2577_v51  ;;  %v2441_v2 = vrot.slane %v2037_v63, 7 }
 0x3aa   : > { %v4392_v62 = vsel %vm2085_vm4, %v2373_v46, %v2372_v43  ;;  %v2475_v60 = vsel %vm2082_vm3, %v2474_v47, %v2473_v16  ;;  %v2509_v53 = vsel %vm2082_vm3, %v2508_v48, %v2507_v18  ;;  %v2543_v61 = vsel %vm2082_vm3, %v2542_v31, %v2541_v17 }
 0x3ab   : > { %v4401_v7 = vsel %vm2085_vm4, %v2407_v26, %v2406_v30  ;;  %v2510_v4 = vrot.slane %v2037_v63, 1  ;;  %v2544_v12 = vrot.slane %v2037_v63, 2  ;;  %v2611_v51 = vsel %vm2082_vm3, %v2610_v40, %v2609_v35 }
 0x3ac   : > { %v2612_v47 = vrot.slane %v2037_v63, 4  ;;  %v4410_v18 = vsel %vm2085_vm4, %v2441_v2, %v2440_v15  ;;  %v4413_v17 = vsel %vm2085_vm4, %v2037_v63, %v2475_v60 }
 0x3ad   : > { %v4416_v48 = vsel %vm2085_vm4, %v2510_v4, %v2509_v53  ;;  %v4419_v35 = vsel %vm2085_vm4, %v2544_v12, %v2543_v61 }
 0x3ae   : > { %v4427_v46 = vsel %vm2085_vm4, %v2612_v47, %v2611_v51 }
 0x3b6   : > { %v2981_v56 = vpop.f32.mrf.mxu0 }
 0x3b7   : > { %v1880_v21 = vadd.f32 %v2981_v56, %v4183_v22 }
 0x3b8   : > { %v1871_v33 = vpop.f32.mrf.mxu0 }
 0x3b9   : > { %v2008_v34 = vadd.f32 %v1976_v29, %v1880_v21  ;;  %v1872_v25 = vadd.f32 %v4183_v22, %v1871_v33 }
 0x3ba   : > { %v2982_v10 = vpop.f32.mrf.mxu0 }
 0x3bb   : > { %v4404_v43 = vmax.f32 %v2008_v34, 0.0  ;;  %v2006_v29 = vadd.f32 %v1974_v19, %v1872_v25  ;;  %v1883_v16 = vadd.f32 %v2982_v10, %v4183_v22 }
 0x3bc   : > { %v1874_v56 = vpop.f32.mrf.mxu0 }
 0x3bd   : > { %v4421_v31 = vmax.f32 %v2006_v29, 0.0  ;;  %v2009_v19 = vadd.f32 %v1977_v20, %v1883_v16  ;;  %v1875_v49 = vadd.f32 %v4183_v22, %v1874_v56  ;;  %v2294_v63 = vrot.slane %v4404_v43, 1 }
 0x3be   : > { %v2123_v40 = vrot.slane %v4404_v43, 4  ;;  %v2157_v21 = vrot.slane %v4404_v43, 5  ;;  %v2191_v30 = vrot.slane %v4404_v43, 6  ;;  %v2225_v15 = vrot.slane %v4404_v43, 7 }
 0x3bf   : > { %v2007_v26 = vadd.f32 %v1975_v9, %v1875_v49  ;;  %v2292_v57 = vrot.slane %v4421_v31, 2  ;;  %v2121_v20 = vrot.slane %v4421_v31, 5  ;;  %v4438_v33 = vmax.f32 %v2009_v19, 0.0 }
 0x3c0   : > { %v2985_v2 = vpop.f32.mrf.mxu0  ;;  %v2155_v60 = vrot.slane %v4421_v31, 6  ;;  %v2189_v34 = vrot.slane %v4421_v31, 7  ;;  %v2258_v25 = vrot.slane %v4421_v31, 1  ;;  %v2224_v61 = vsel %vm2088_vm5, %v4421_v31, %v4373_v58 }
 0x3c1   : > { %v1896_v53 = vadd.f32 %v2985_v2, %v4183_v22  ;;  %v2293_v6 = vsel %vm2088_vm5, %v2292_v57, %v4358_v14  ;;  %v2122_v9 = vsel %vm2088_vm5, %v2121_v20, %v4365_v5  ;;  %v4451_v10 = vmax.f32 %v2007_v26, 0.0 }
 0x3c2   : > { %v1887_v4 = vpop.f32.mrf.mxu0  ;;  %v2295_v12 = vsel %vm2091_vm6, %v2294_v63, %v2293_v6  ;;  %v2156_v51 = vsel %vm2088_vm5, %v2155_v60, %v4361_v11  ;;  %v2190_v29 = vsel %vm2088_vm5, %v2189_v34, %v4369_v54  ;;  %v2124_v16 = vsel %vm2091_vm6, %v2123_v40, %v2122_v9 }
 0x3c3   : > { %v2012_v14 = vadd.f32 %v1980_v36, %v1896_v53  ;;  %v1888_v5 = vadd.f32 %v4183_v22, %v1887_v4  ;;  %v2158_v58 = vsel %vm2091_vm6, %v2157_v21, %v2156_v51  ;;  %v2192_v56 = vsel %vm2091_vm6, %v2191_v30, %v2190_v29 }
 0x3c4   : > { %v2986_v47 = vpop.f32.mrf.mxu0  ;;  %v2226_v19 = vsel %vm2091_vm6, %v2225_v15, %v2224_v61  ;;  %v2259_v11 = vsel %vm2088_vm5, %v2258_v25, %v4376_v3  ;;  %v2326_v49 = vrot.slane %v4421_v31, 3  ;;  %v2328_v40 = vrot.slane %v4404_v43, 2 }
 0x3c5   : > { %v4468_v54 = vmax.f32 %v2012_v14, 0.0  ;;  %v2010_v36 = vadd.f32 %v1978_v45, %v1888_v5  ;;  %v1899_v63 = vadd.f32 %v2986_v47, %v4183_v22  ;;  %v2260_v30 = vsel %vm2091_vm6, %v4404_v43, %v2259_v11 }
 0x3c6   : > { %v1890_v21 = vpop.f32.mrf.mxu0  ;;  %v2327_v26 = vsel %vm2088_vm5, %v2326_v49, %v4382_v38  ;;  %v2580_v3 = vrot.slane %v4451_v10, 2  ;;  %v2582_v57 = vrot.slane %v4438_v33, 1  ;;  %v2375_v53 = vrot.slane %v4451_v10, 4 }
 0x3c7   : > { %v4480_v20 = vmax.f32 %v2010_v36, 0.0  ;;  %v2013_v45 = vadd.f32 %v1981_v32, %v1899_v63  ;;  %v1891_v15 = vadd.f32 %v4183_v22, %v1890_v21  ;;  %v2297_v2 = vrot.slane %v4468_v54, 7 }
 0x3c8   : > { %v2989_v60 = vpop.f32.mrf.mxu0  ;;  %v2127_v34 = vrot.slane %v4468_v54, 2  ;;  %v2161_v25 = vrot.slane %v4468_v54, 3  ;;  %v2195_v38 = vrot.slane %v4468_v54, 4  ;;  %v2229_v32 = vrot.slane %v4468_v54, 5 }
 0x3c9   : > { %v2011_v6 = vadd.f32 %v1979_v52, %v1891_v15  ;;  %v1912_v9 = vadd.f32 %v2989_v60, %v4183_v22  ;;  %v2296_v42 = vsel %vm2094_vm7, %v4480_v20, %v2295_v12  ;;  %v2125_v51 = vrot.slane %v4480_v20, 3 }
 0x3ca   : > { %v1903_v61 = vpop.f32.mrf.mxu0  ;;  %v2298_v4 = vsel %vm2097_vm8, %v2297_v2, %v2296_v42  ;;  %v2159_v29 = vrot.slane %v4480_v20, 4  ;;  %v2193_v14 = vrot.slane %v4480_v20, 5  ;;  %v4500_v5 = vmax.f32 %v2013_v45, 0.0 }
 0x3cb   : > { %v2016_v50 = vadd.f32 %v1984_v1, %v1912_v9  ;;  %v1904_v52 = vadd.f32 %v4183_v22, %v1903_v61  ;;  %2313 = vrot.lane.b32.xlu0 %v2298_v4, %s3191_s19  ;;  %v2227_v12 = vrot.slane %v4480_v20, 6  ;;  %v2126_v11 = vsel %vm2094_vm7, %v2125_v51, %v2124_v16 }
 0x3cc   : > { %v2990_v47 = vpop.f32.mrf.mxu0  ;;  %v2160_v49 = vsel %vm2094_vm7, %v2159_v29, %v2158_v58  ;;  %v2194_v36 = vsel %vm2094_vm7, %v2193_v14, %v2192_v56  ;;  %v2261_v63 = vrot.slane %v4480_v20, 7  ;;  %v4511_v21 = vmax.f32 %v2011_v6, 0.0 }
 0x3cd   : > { %v4513_v45 = vmax.f32 %v2016_v50, 0.0  ;;  %v2014_v1 = vadd.f32 %v1982_v44, %v1904_v52  ;;  %v1915_v15 = vadd.f32 %v2990_v47, %v4183_v22  ;;  %v2128_v60 = vsel %vm2097_vm8, %v2127_v34, %v2126_v11 }
 0x3ce   : > { %v1906_v2 = vpop.f32.mrf.mxu0  ;;  %v2162_v16 = vsel %vm2097_vm8, %v2161_v25, %v2160_v49  ;;  %v2196_v58 = vsel %vm2097_vm8, %v2195_v38, %v2194_v36  ;;  %v2228_v56 = vsel %vm2094_vm7, %v2227_v12, %v2226_v19  ;;  %v2262_v44 = vsel %vm2094_vm7, %v2261_v63, %v2260_v30 }
 0x3cf   : > { %v4522_v9 = vmax.f32 %v2014_v1, 0.0  ;;  %v2017_v6 = vadd.f32 %v1985_v37, %v1915_v15  ;;  %v1907_v42 = vadd.f32 %v4183_v22, %v1906_v2  ;;  %2143 = vrot.lane.b32.xlu0 %v2128_v60, %s3184_s21  ;;  %v2230_v34 = vsel %vm2097_vm8, %v2229_v32, %v2228_v56 }
 0x3d0   : > { %v2993_v61 = vpop.f32.mrf.mxu0  ;;  %v2263_v25 = vrot.slane %v4468_v54, 6  ;;  %v2330_v38 = vrot.slane %v4480_v20, 1  ;;  %v2581_v19 = vsel %vm2088_vm5, %v2580_v3, %v4389_v41  ;;  %v2329_v4 = vsel %vm2091_vm6, %v2328_v40, %v2327_v26 }
 0x3d1   : > { %v2015_v0 = vadd.f32 %v1983_v39, %v1907_v42  ;;  %v1928_v37 = vadd.f32 %v2993_v61, %v4183_v22  ;;  %v2583_v51 = vsel %vm2091_vm6, %v2582_v57, %v2581_v19  ;;  %v4539_v30 = vmax.f32 %v2017_v6, 0.0 }
 0x3d2   : > { %v1919_v29 = vpop.f32.mrf.mxu0  ;;  %v4542_v32 = vsel %vm2097_vm8, %v2263_v25, %v2262_v44  ;;  %v2331_v14 = vsel %vm2094_vm7, %v2330_v38, %v2329_v4  ;;  %v2584_v41 = vsel %vm2094_vm7, %v4511_v21, %v2583_v51  ;;  %v2585_v26 = vrot.slane %v4500_v5, 7 }
 0x3d3   : > { %v4547_v3 = vmax.f32 %v2015_v0, 0.0  ;;  %v2020_v39 = vadd.f32 %v5105_v8, %v1928_v37  ;;  %v1920_v40 = vadd.f32 %v4183_v22, %v1919_v29  ;;  %2177 = vrot.lane.b32.xlu0 %v2162_v16, %s3186_s8  ;;  %v4556_v50 = vsel %vm2097_vm8, %v4468_v54, %v2331_v14 }
 0x3d4   : > { %v2994_v57 = vpop.f32.mrf.mxu0  ;;  %v2376_v52 = vsel %vm2088_vm5, %v2375_v53, %v4392_v62  ;;  %v2377_v12 = vrot.slane %v4438_v33, 3  ;;  %v2379_v47 = vrot.slane %v4511_v21, 2  ;;  %v5106_v49 = vunpack.c.l.bf16 %v4247_v55 }
 0x3d5   : > { %v4562_v11 = vmax.f32 %v2020_v39, 0.0  ;;  %v1931_v63 = vadd.f32 %v2994_v57, %v4183_v22  ;;  %v2381_v1 = vrot.slane %v4500_v5, 1  ;;  %v2299_v60 = vrot.slane %v4522_v9, 6 }
 0x3d6   : > { %v2018_v36 = vadd.f32 %v5106_v49, %v1920_v40  ;;  %v1922_v15 = vpop.f32.mrf.mxu0  ;;  %v2378_v2 = vsel %vm2091_vm6, %v2377_v12, %v2376_v52  ;;  %v2300_v62 = vrot.slane %v4513_v45, 5  ;;  %v2409_v53 = vrot.slane %v4451_v10, 5 }
 0x3d7   : > { %v5107_v56 = vunpack.c.h.bf16 %v4242_v13  ;;  %v1923_v42 = vadd.f32 %v4183_v22, %v1922_v15  ;;  %2211 = vrot.lane.b32.xlu0 %v2196_v58, %s3187_s9  ;;  %v2380_v44 = vsel %vm2094_vm7, %v2379_v47, %v2378_v2  ;;  %v4580_v25 = vsel %vm2097_vm8, %v2585_v26, %v2584_v41 }
 0x3d8   : > { %v4572_v16 = vmax.f32 %v2018_v36, 0.0  ;;  %v2997_v61 = vpop.f32.mrf.mxu0  ;;  %v4583_v38 = vsel %vm2097_vm8, %v2381_v1, %v2380_v44  ;;  %v2301_v19 = vsel %vm2079_vm2, %v2300_v62, %v2299_v60  ;;  %v2304_v0 = vrot.slane %v4562_v11, 3 }
 0x3d9   : > { %v2021_v6 = vadd.f32 %v5107_v56, %v1931_v63  ;;  %v5108_v13 = vunpack.c.h.bf16 %v4247_v55  ;;  %v1944_v4 = vadd.f32 %v2997_v61, %v4183_v22  ;;  %v2410_v51 = vsel %vm2088_vm5, %v2409_v53, %v4401_v7 }
 0x3da   : > { %v2302_v58 = vrot.slane %v4572_v16, 4  ;;  %v1935_v14 = vpop.f32.mrf.mxu0  ;;  %v2411_v41 = vrot.slane %v4438_v33, 4  ;;  %v2413_v8 = vrot.slane %v4511_v21, 3  ;;  %v2129_v39 = vrot.slane %v4522_v9, 1 }
 0x3db   : > { %v2019_v37 = vadd.f32 %v5108_v13, %v1923_v42  ;;  %v4593_v29 = vmax.f32 %v2021_v6, 0.0  ;;  %v5109_v40 = vunpack.c.l.bf16 %v4254_v59  ;;  %v1936_v26 = vadd.f32 %v4183_v22, %v1935_v14  ;;  %2245 = vrot.lane.b32.xlu0 %v2230_v34, %s3189_s14 }
 0x3dc   : > { %v2303_v57 = vsel %vm2082_vm3, %v2302_v58, %v2301_v19  ;;  %v2415_v7 = vrot.slane %v4500_v5, 2  ;;  %v2998_v12 = vpop.f32.mrf.mxu0  ;;  %v2412_v47 = vsel %vm2091_vm6, %v2411_v41, %v2410_v51  ;;  %v2130_v49 = vsel %vm2079_vm2, %v4513_v45, %v2129_v39 }
 0x3dd   : > { %v2024_v55 = vadd.f32 %v5109_v40, %v1944_v4  ;;  %v4604_v52 = vmax.f32 %v2019_v37, 0.0  ;;  %v2131_v36 = vrot.slane %v4572_v16, 7  ;;  %v5110_v1 = vunpack.c.l.bf16 %v4258_v24 }
 0x3de   : > { %v1947_v34 = vadd.f32 %v2998_v12, %v4183_v22  ;;  %v2414_v2 = vsel %vm2094_vm7, %v2413_v8, %v2412_v47  ;;  %v1938_v60 = vpop.f32.mrf.mxu0  ;;  %v2305_v62 = vsel %vm2085_vm4, %v2304_v0, %v2303_v57  ;;  %v2133_v56 = vrot.slane %v4562_v11, 6 }
 0x3df   : > { %v4610_v63 = vmax.f32 %v2024_v55, 0.0  ;;  %v2022_v15 = vadd.f32 %v5110_v1, %v1936_v26  ;;  %v2132_v53 = vsel %vm2082_vm3, %v2131_v36, %v2130_v49  ;;  %v2443_v6 = vrot.slane %v4451_v10, 6  ;;  %2279 = vrot.lane.b32.xlu0 %v4542_v32, %s3192_s22 }
 0x3e0   : > { %v5111_v44 = vunpack.c.h.bf16 %v4254_v59  ;;  %v1939_v19 = vadd.f32 %v4183_v22, %v1938_v60  ;;  %v4628_v13 = vsel %vm2097_vm8, %v2415_v7, %v2414_v2  ;;  %v2134_v37 = vsel %vm2085_vm4, %v2133_v56, %v2132_v53 }
 0x3e1   : > { %v4620_v42 = vmax.f32 %v2022_v15, 0.0  ;;  %v2308_v0 = vrot.slane %v4610_v63, 1  ;;  %v2444_v4 = vsel %vm2088_vm5, %v2443_v6, %v4410_v18  ;;  %v2445_v58 = vrot.slane %v4438_v33, 5  ;;  %v3001_v14 = vpop.f32.mrf.mxu0 }
 0x3e2   : > { %v2025_v61 = vadd.f32 %v5111_v44, %v1947_v34  ;;  %v5112_v59 = vunpack.c.h.bf16 %v4258_v24  ;;  %v2137_v8 = vrot.slane %v4610_v63, 4  ;;  %v1960_v40 = vadd.f32 %v3001_v14, %v4183_v22 }
 0x3e3   : > { %v2306_v41 = vrot.slane %v4620_v42, 2  ;;  %v2135_v32 = vrot.slane %v4620_v42, 5  ;;  %v2446_v55 = vsel %vm2091_vm6, %v2445_v58, %v2444_v4  ;;  %v2447_v18 = vrot.slane %v4511_v21, 4  ;;  %v1951_v26 = vpop.f32.mrf.mxu0  ;;  %2347 = vrot.lane.b32.xlu0 %v4556_v50, %s3193_s23 }
 0x3e4   : > { %v2023_v51 = vadd.f32 %v5112_v59, %v1939_v19  ;;  %v4640_v39 = vmax.f32 %v2025_v61, 0.0  ;;  %v2449_v7 = vrot.slane %v4500_v5, 3  ;;  %v2163_v12 = vrot.slane %v4522_v9, 2 }
 0x3e5   : > { %v2307_v24 = vsel %vm2088_vm5, %v2306_v41, %v2305_v62  ;;  %v2136_v57 = vsel %vm2088_vm5, %v2135_v32, %v2134_v37  ;;  %v5113_v49 = vunpack.c.l.bf16 %v4295_v23  ;;  %v1952_v1 = vadd.f32 %v4183_v22, %v1951_v26  ;;  %v3002_v34 = vpop.f32.mrf.mxu0 }
 0x3e6   : > { %v4651_v47 = vmax.f32 %v2023_v51, 0.0  ;;  %v2309_v15 = vsel %vm2091_vm6, %v2308_v0, %v2307_v24  ;;  %v2138_v50 = vsel %vm2091_vm6, %v2137_v8, %v2136_v57  ;;  %v2448_v2 = vsel %vm2094_vm7, %v2447_v18, %v2446_v55 }
 0x3e7   : > { %v2028_v36 = vadd.f32 %v5113_v49, %v1960_v40  ;;  %v2164_v60 = vrot.slane %v4513_v45, 1  ;;  %v2167_v62 = vrot.slane %v4562_v11, 7  ;;  %v5114_v56 = vunpack.c.l.bf16 %v4300_v28  ;;  %v1954_v19 = vpop.f32.mrf.mxu0  ;;  %2601 = vrot.lane.b32.xlu0 %v4580_v25, %s3194_s16 }
 0x3e8   : > { %v1963_v44 = vadd.f32 %v3002_v34, %v4183_v22  ;;  %v2169_v61 = vrot.slane %v4620_v42, 6  ;;  %v2450_v0 = vsel %vm2097_vm8, %v2449_v7, %v2448_v2  ;;  %v2171_v4 = vrot.slane %v4610_v63, 5 }
 0x3e9   : > { %v4661_v53 = vmax.f32 %v2028_v36, 0.0  ;;  %v2026_v6 = vadd.f32 %v5114_v56, %v1952_v1  ;;  %v2165_v37 = vsel %vm2079_vm2, %v2164_v60, %v2163_v12  ;;  %v2477_v58 = vrot.slane %v4451_v10, 7 }
 0x3ea   : > { %v5115_v51 = vunpack.c.h.bf16 %v4295_v23  ;;  %v1955_v41 = vadd.f32 %v4183_v22, %v1954_v19  ;;  %v2166_v25 = vsel %vm2082_vm3, %v4572_v16, %v2165_v37  ;;  %v2479_v55 = vrot.slane %v4438_v33, 6 }
 0x3eb   : > { %v4673_v59 = vmax.f32 %v2026_v6, 0.0  ;;  %v2311_v32 = vrot.slane %v4661_v53, 7  ;;  %v2141_v8 = vrot.slane %v4661_v53, 2  ;;  %v2478_v40 = vsel %vm2088_vm5, %v2477_v58, %v4413_v17  ;;  %2397 = vrot.lane.b32.xlu0 %v4583_v38, %s3195_s20 }
 0x3ec   : > { %v2029_v14 = vadd.f32 %v5115_v51, %v1963_v44  ;;  %v5116_v18 = vunpack.c.h.bf16 %v4300_v28  ;;  %v2175_v24 = vrot.slane %v4661_v53, 3  ;;  %v2168_v7 = vsel %vm2085_vm4, %v2167_v62, %v2166_v25 }
 0x3ed   : > { %v2310_v23 = vsel %vm2094_vm7, %v4673_v59, %v2309_v15  ;;  %v2139_v22 = vrot.slane %v4673_v59, 3  ;;  %v2173_v28 = vrot.slane %v4673_v59, 4  ;;  %v2170_v49 = vsel %vm2088_vm5, %v2169_v61, %v2168_v7 }
 0x3ee   : > { %v2027_v26 = vadd.f32 %v5116_v18, %v1955_v41  ;;  %v4691_v57 = vmax.f32 %v2029_v14, 0.0  ;;  %v2312_v17 = vsel %vm2097_vm8, %v2311_v32, %v2310_v23  ;;  %v2480_v36 = vsel %vm2091_vm6, %v2479_v55, %v2478_v40 }
 0x3ef   : > { %2315 = vrot.lane.b32.xlu1 %v2312_v17, %s3191_s19  ;;  %v2140_v12 = vsel %vm2094_vm7, %v2139_v22, %v2138_v50  ;;  %v2481_v1 = vrot.slane %v4511_v21, 5  ;;  %v2172_v38 = vsel %vm2091_vm6, %v2171_v4, %v2170_v49  ;;  %v2483_v34 = vrot.slane %v4500_v5, 4  ;;  %2431 = vrot.lane.b32.xlu0 %v4628_v13, %s3196_s29  ;;  %s4984_s19 = scalar_lea.vmem [#allocation2], %s2764_s18 }
 0x3f0   : > { %v4703_v15 = vmax.f32 %v2027_v26, 0.0  ;;  %v2197_v2 = vrot.slane %v4522_v9, 3  ;;  %v2174_v60 = vsel %vm2094_vm7, %v2173_v28, %v2172_v38  ;;  %v2198_v50 = vrot.slane %v4513_v45, 2 }
 0x3f1   : > { %v2482_v62 = vsel %vm2094_vm7, %v2481_v1, %v2480_v36  ;;  %v2200_v56 = vrot.slane %v4572_v16, 1  ;;  %v2142_v6 = vsel %vm2097_vm8, %v2141_v8, %v2140_v12  ;;  %v2176_v44 = vsel %vm2097_vm8, %v2175_v24, %v2174_v60 }
 0x3f2   : > { %v2484_v61 = vsel %vm2097_vm8, %v2483_v34, %v2482_v62  ;;  %v2203_v19 = vrot.slane %v4620_v42, 7  ;;  %v2199_v37 = vsel %vm2079_vm2, %v2198_v50, %v2197_v2  ;;  %v2205_v4 = vrot.slane %v4610_v63, 6 }
 0x3f3   : > { %2145 = vrot.lane.b32.xlu1 %v2142_v6, %s3184_s21  ;;  %v2207_v58 = vrot.slane %v4673_v59, 5  ;;  %v2512_v13 = vsel %vm2088_vm5, %v4451_v10, %v4416_v48  ;;  %v2201_v51 = vsel %vm2082_vm3, %v2200_v56, %v2199_v37  ;;  %v2209_v14 = vrot.slane %v4661_v53, 4  ;;  %2465 = vrot.lane.b32.xlu0 %v2450_v0, %s3197_s13 }
 0x3f4   : > { %v2513_v41 = vrot.slane %v4438_v33, 7  ;;  %v2515_v32 = vrot.slane %v4511_v21, 6  ;;  %v2202_v8 = vsel %vm2085_vm4, %v4562_v11, %v2201_v51  ;;  %v2231_v25 = vrot.slane %v4522_v9, 4 }
 0x3f5   : > { %v2232_v40 = vrot.slane %v4513_v45, 3  ;;  %v2234_v55 = vrot.slane %v4572_v16, 2  ;;  %v2204_v48 = vsel %vm2088_vm5, %v2203_v19, %v2202_v8  ;;  %v2517_v26 = vrot.slane %v4500_v5, 5 }
 0x3f6   : > { %v2514_v18 = vsel %vm2091_vm6, %v2513_v41, %v2512_v13  ;;  %v2236_v23 = vrot.slane %v4562_v11, 1  ;;  %v2206_v22 = vsel %vm2091_vm6, %v2205_v4, %v2204_v48  ;;  %v2239_v7 = vrot.slane %v4610_v63, 7 }
 0x3f7   : > { %2179 = vrot.lane.b32.xlu1 %v2176_v44, %s3186_s8  ;;  %v2516_v24 = vsel %vm2094_vm7, %v2515_v32, %v2514_v18  ;;  %v2233_v17 = vsel %vm2079_vm2, %v2232_v40, %v2231_v25  ;;  %v2208_v0 = vsel %vm2094_vm7, %v2207_v58, %v2206_v22  ;;  %v2241_v49 = vrot.slane %v4673_v59, 6  ;;  %s3198_s8 = smov 88  }
 0x3f8   : > { %v2518_v28 = vsel %vm2097_vm8, %v2517_v26, %v2516_v24  ;;  %v2235_v12 = vsel %vm2082_vm3, %v2234_v55, %v2233_v17  ;;  %v2210_v36 = vsel %vm2097_vm8, %v2209_v14, %v2208_v0  ;;  %v2243_v38 = vrot.slane %v4661_v53, 5  ;;  %2499 = vrot.lane.b32.xlu0 %v2484_v61, %s3198_s8 }
 0x3f9   : > { %v2237_v1 = vsel %vm2085_vm4, %v2236_v23, %v2235_v12  ;;  %v2546_v34 = vrot.slane %v4451_v10, 1  ;;  %v2549_v60 = vrot.slane %v4511_v21, 7  ;;  %v2265_v62 = vrot.slane %v4522_v9, 5 }
 0x3fa   : > { %v2238_v2 = vsel %vm2088_vm5, %v4620_v42, %v2237_v1  ;;  %v2266_v50 = vrot.slane %v4513_v45, 4  ;;  %v2551_v44 = vrot.slane %v4500_v5, 6  ;;  %v2268_v61 = vrot.slane %v4572_v16, 3 }
 0x3fb   : > { %2213 = vrot.lane.b32.xlu1 %v2210_v36, %s3187_s9  ;;  %v2240_v56 = vsel %vm2091_vm6, %v2239_v7, %v2238_v2  ;;  %v2547_v6 = vsel %vm2088_vm5, %v2546_v34, %v4419_v35  ;;  %v2270_v4 = vrot.slane %v4562_v11, 2  ;;  %v2272_v58 = vrot.slane %v4620_v42, 1  ;;  %s3199_s9 = smov 96  }
 0x3fc   : > { %v2242_v19 = vsel %vm2094_vm7, %v2241_v49, %v2240_v56  ;;  %v2267_v37 = vsel %vm2079_vm2, %v2266_v50, %v2265_v62  ;;  %v2548_v51 = vsel %vm2091_vm6, %v4438_v33, %v2547_v6  ;;  %v2275_v35 = vrot.slane %v4673_v59, 7  ;;  %2533 = vrot.lane.b32.xlu0 %v2518_v28, %s3199_s9 }
 0x3fd   : > { %v2244_v13 = vsel %vm2097_vm8, %v2243_v38, %v2242_v19  ;;  %v2269_v14 = vsel %vm2082_vm3, %v2268_v61, %v2267_v37  ;;  %v2550_v41 = vsel %vm2094_vm7, %v2549_v60, %v2548_v51  ;;  %v2277_v8 = vrot.slane %v4661_v53, 6 }
 0x3fe   : > { %v2271_v32 = vsel %vm2085_vm4, %v2270_v4, %v2269_v14  ;;  %v2614_v25 = vrot.slane %v4451_v10, 3  ;;  %v2616_v55 = vrot.slane %v4438_v33, 2  ;;  %v2618_v48 = vrot.slane %v4511_v21, 1 }
 0x3ff   : > { %2247 = vrot.lane.b32.xlu1 %v2244_v13, %s3189_s14  ;;  %v2273_v40 = vsel %vm2088_vm5, %v2272_v58, %v2271_v32  ;;  %v2333_v18 = vrot.slane %v4522_v9, 7  ;;  %v2334_v22 = vrot.slane %v4513_v45, 6  ;;  %v2336_v10 = vrot.slane %v4572_v16, 5  ;;  %s3200_s14 = smov 104  }
 0x400   : > { %v2274_v26 = vsel %vm2091_vm6, %v4610_v63, %v2273_v40  ;;  %v2615_v23 = vsel %vm2088_vm5, %v2614_v25, %v4427_v46  ;;  %v2552_v24 = vsel %vm2097_vm8, %v2551_v44, %v2550_v41  ;;  %v2340_v21 = vrot.slane %v4620_v42, 3 }
 0x401   : > { %v2276_v17 = vsel %vm2094_vm7, %v2275_v35, %v2274_v26  ;;  %v2617_v33 = vsel %vm2091_vm6, %v2616_v55, %v2615_v23  ;;  %2567 = vrot.lane.b32.xlu0 %v2552_v24, %s3200_s14  ;;  %v2335_v46 = vsel %vm2079_vm2, %v2334_v22, %v2333_v18  ;;  %v2338_v28 = vrot.slane %v4562_v11, 4 }
 0x402   : > { %v2278_v7 = vsel %vm2097_vm8, %v2277_v8, %v2276_v17  ;;  %v2619_v0 = vsel %vm2094_vm7, %v2618_v48, %v2617_v33  ;;  %v2337_v12 = vsel %vm2082_vm3, %v2336_v10, %v2335_v46  ;;  %v2342_v49 = vrot.slane %v4610_v63, 2 }
 0x403   : > { %2281 = vrot.lane.b32.xlu1 %v2278_v7, %s3192_s22  ;;  %v2344_v36 = vrot.slane %v4673_v59, 1  ;;  %v2587_v1 = vrot.slane %v4547_v3, 6  ;;  %v2620_v38 = vsel %vm2097_vm8, %v4500_v5, %v2619_v0  ;;  %v2339_v34 = vsel %vm2085_vm4, %v2338_v28, %v2337_v12  ;;  %s2698_s22 = sshll.u32 %s4984_s19, 4  ;;  %s5003_s22 = int_to_ptr.vmem [resolvable:$true] %s2698_s22 }
 0x404   : > { %v2588_v2 = vrot.slane %v4539_v30, 5  ;;  %v2590_v60 = vrot.slane %v4604_v52, 4  ;;  %v2341_v62 = vsel %vm2088_vm5, %v2340_v21, %v2339_v34  ;;  %v2592_v50 = vrot.slane %v4593_v29, 3 }
 0x405   : > { %v2594_v56 = vrot.slane %v4651_v47, 2  ;;  %v2596_v6 = vrot.slane %v4640_v39, 1  ;;  %2635 = vrot.lane.b32.xlu0 %v2620_v38, %s3201_s15  ;;  %v2343_v44 = vsel %vm2091_vm6, %v2342_v49, %v2341_v62  ;;  %v2383_v61 = vrot.slane %v4539_v30, 7 }
 0x406   : > { %v2589_v5 = vsel %vm2079_vm2, %v2588_v2, %v2587_v1  ;;  %v2385_v19 = vrot.slane %v4604_v52, 6  ;;  %v2345_v37 = vsel %vm2094_vm7, %v2344_v36, %v2343_v44  ;;  %v2599_v58 = vrot.slane %v4691_v57, 7 }
 0x407   : > { %v2591_v4 = vsel %vm2082_vm3, %v2590_v60, %v2589_v5  ;;  %v2389_v13 = vrot.slane %v4651_v47, 4  ;;  %v2346_v51 = vsel %vm2097_vm8, %v4661_v53, %v2345_v37  ;;  %v2384_v35 = vsel %vm2079_vm2, %v2383_v61, %v4547_v3 }
 0x408   : > { %v2593_v14 = vsel %vm2085_vm4, %v2592_v50, %v2591_v4  ;;  %v2387_v41 = vrot.slane %v4593_v29, 5  ;;  %2349 = vrot.lane.b32.xlu1 %v2346_v51, %s3193_s23  ;;  %v2386_v8 = vsel %vm2082_vm3, %v2385_v19, %v2384_v35  ;;  %v2391_v25 = vrot.slane %v4640_v39, 3  ;;  %s2843_s23 = sshll.u32 %s3265_s28, 8  ;;  %s3120_s28 = scalar_lea.vmem %s5003_s22, 256 }
 0x409   : > { %v2595_v32 = vsel %vm2088_vm5, %v2594_v56, %v2593_v14  ;;  %v2393_v40 = vrot.slane %v4703_v15, 2  ;;  %v2417_v18 = vrot.slane %v4547_v3, 1  ;;  %v2419_v26 = vrot.slane %v4604_v52, 7  ;;  %p3121_p11 = scmp.ne.s32.totalorder %s5003_s22, %s3120_s28 }
 0x40a   : > { %v2597_v55 = vsel %vm2091_vm6, %v2596_v6, %v2595_v32  ;;  %v2388_v48 = vsel %vm2085_vm4, %v2387_v41, %v2386_v8  ;;  %v2395_v10 = vrot.slane %v4691_v57, 1  ;;  %v2423_v24 = vrot.slane %v4651_v47, 5 }
 0x40b   : > { %v2598_v23 = vsel %vm2094_vm7, %v4703_v15, %v2597_v55  ;;  %v2390_v22 = vsel %vm2088_vm5, %v2389_v13, %v2388_v48  ;;  %v2418_v21 = vsel %vm2079_vm2, %v4539_v30, %v2417_v18  ;;  %v2421_v7 = vrot.slane %v4593_v29, 6  ;;  %p3122_p12 = pnand %p3121_p11, %p3282_p5 }
 0x40c   : > { %v2600_v17 = vsel %vm2097_vm8, %v2599_v58, %v2598_v23  ;;  %v2392_v33 = vsel %vm2091_vm6, %v2391_v25, %v2390_v22  ;;  %v2420_v46 = vsel %vm2082_vm3, %v2419_v26, %v2418_v21  ;;  %v2425_v28 = vrot.slane %v4640_v39, 4 }
 0x40d   : > { %2603 = vrot.lane.b32.xlu1 %v2600_v17, %s3194_s16  ;;  %v2394_v0 = vsel %vm2094_vm7, %v2393_v40, %v2392_v33  ;;  %v2427_v12 = vrot.slane %v4703_v15, 3  ;;  %v2422_v49 = vsel %vm2085_vm4, %v2421_v7, %v2420_v46  ;;  %v2429_v36 = vrot.slane %v4691_v57, 2  ;;  %p3123_p13 = pneg %p3122_p12 }
 0x40e   : > { %v2451_v1 = vrot.slane %v4547_v3, 2  ;;  %v2452_v38 = vrot.slane %v4539_v30, 1  ;;  %v2396_v34 = vsel %vm2097_vm8, %v2395_v10, %v2394_v0  ;;  %v2424_v2 = vsel %vm2088_vm5, %v2423_v24, %v2422_v49 }
 0x40f   : > { %v2455_v60 = vrot.slane %v4593_v29, 7  ;;  %v2457_v62 = vrot.slane %v4651_v47, 6  ;;  %v2426_v50 = vsel %vm2091_vm6, %v2425_v28, %v2424_v2  ;;  %v2459_v6 = vrot.slane %v4640_v39, 5 }
 0x410   : > { %v2453_v56 = vsel %vm2079_vm2, %v2452_v38, %v2451_v1  ;;  %v2461_v44 = vrot.slane %v4703_v15, 4  ;;  %v2428_v5 = vsel %vm2094_vm7, %v2427_v12, %v2426_v50  ;;  %v2485_v19 = vrot.slane %v4547_v3, 3 }
 0x411   : > { %2399 = vrot.lane.b32.xlu1 %v2396_v34, %s3195_s20  ;;  %v2454_v61 = vsel %vm2082_vm3, %v4604_v52, %v2453_v56  ;;  %v2486_v37 = vrot.slane %v4539_v30, 2  ;;  %v2463_v58 = vrot.slane %v4691_v57, 3  ;;  %v2488_v13 = vrot.slane %v4604_v52, 1 }
 0x412   : > { %v2456_v4 = vsel %vm2085_vm4, %v2455_v60, %v2454_v61  ;;  %v2491_v51 = vrot.slane %v4651_v47, 7  ;;  %v2430_v14 = vsel %vm2097_vm8, %v2429_v36, %v2428_v5  ;;  %v2493_v32 = vrot.slane %v4640_v39, 6 }
 0x413   : > { %v2458_v35 = vsel %vm2088_vm5, %v2457_v62, %v2456_v4  ;;  %v2487_v41 = vsel %vm2079_vm2, %v2486_v37, %v2485_v19  ;;  %v2495_v40 = vrot.slane %v4703_v15, 5  ;;  %v2519_v55 = vrot.slane %v4547_v3, 4 }
 0x414   : > { %v2460_v8 = vsel %vm2091_vm6, %v2459_v6, %v2458_v35  ;;  %v2489_v25 = vsel %vm2082_vm3, %v2488_v13, %v2487_v41  ;;  %v2520_v26 = vrot.slane %v4539_v30, 3  ;;  %v2522_v23 = vrot.slane %v4604_v52, 2 }
 0x415   : > { %2433 = vrot.lane.b32.xlu1 %v2430_v14, %s3196_s29  ;;  %v2462_v48 = vsel %vm2094_vm7, %v2461_v44, %v2460_v8  ;;  %v2490_v18 = vsel %vm2085_vm4, %v4593_v29, %v2489_v25  ;;  %v2524_v33 = vrot.slane %v4593_v29, 1  ;;  %v2527_v21 = vrot.slane %v4640_v39, 7  ;;  %s5009_s29 = scalar_lea.hbm %s5063_s7, %s2843_s23 }
 0x416   : > { %v2464_v22 = vsel %vm2097_vm8, %v2463_v58, %v2462_v48  ;;  %v2492_v10 = vsel %vm2088_vm5, %v2491_v51, %v2490_v18  ;;  %v2521_v17 = vsel %vm2079_vm2, %v2520_v26, %v2519_v55  ;;  %v2553_v46 = vrot.slane %v4547_v3, 5 }
 0x417   : > { %v2494_v24 = vsel %vm2091_vm6, %v2493_v32, %v2492_v10  ;;  %v2523_v0 = vsel %vm2082_vm3, %v2522_v23, %v2521_v17  ;;  %v2554_v28 = vrot.slane %v4539_v30, 4  ;;  %v2497_v12 = vrot.slane %v4691_v57, 4 }
 0x418   : > { %v2496_v7 = vsel %vm2094_vm7, %v2495_v40, %v2494_v24  ;;  %v2525_v49 = vsel %vm2085_vm4, %v2524_v33, %v2523_v0  ;;  %v2529_v36 = vrot.slane %v4703_v15, 6  ;;  %v2556_v1 = vrot.slane %v4604_v52, 3 }
 0x419   : > { %2467 = vrot.lane.b32.xlu1 %v2464_v22, %s3197_s13  ;;  %v2526_v38 = vsel %vm2088_vm5, %v4651_v47, %v2525_v49  ;;  %v2555_v34 = vsel %vm2079_vm2, %v2554_v28, %v2553_v46  ;;  %v2558_v2 = vrot.slane %v4593_v29, 2  ;;  %v2560_v60 = vrot.slane %v4651_v47, 1  ;;  %s5015_s13 = scalar_lea.sflag [#allocation3], %s269_s17 }
 0x41a   : > { %v2498_v62 = vsel %vm2097_vm8, %v2497_v12, %v2496_v7  ;;  %v2557_v50 = vsel %vm2082_vm3, %v2556_v1, %v2555_v34  ;;  %v2621_v56 = vrot.slane %v4547_v3, 7  ;;  %v2528_v6 = vsel %vm2091_vm6, %v2527_v21, %v2526_v38 }
 0x41b   : > { %v2559_v44 = vsel %vm2085_vm4, %v2558_v2, %v2557_v50  ;;  %v2622_v5 = vrot.slane %v4539_v30, 6  ;;  %v2624_v61 = vrot.slane %v4604_v52, 5  ;;  %v2530_v19 = vsel %vm2094_vm7, %v2529_v36, %v2528_v6 }
 0x41c   : > { %v2561_v37 = vsel %vm2088_vm5, %v2560_v60, %v2559_v44  ;;  %v2563_v4 = vrot.slane %v4703_v15, 7  ;;  %v2628_v58 = vrot.slane %v4651_v47, 3  ;;  %v2531_v3 = vrot.slane %v4691_v57, 5 }
 0x41d   : > { %2501 = vrot.lane.b32.xlu1 %v2498_v62, %s3198_s8  ;;  %v2623_v13 = vsel %vm2079_vm2, %v2622_v5, %v2621_v56  ;;  %v2626_v51 = vrot.slane %v4593_v29, 4  ;;  %v2562_v14 = vsel %vm2091_vm6, %v4640_v39, %v2561_v37  ;;  %v2632_v32 = vrot.slane %v4703_v15, 1  ;;  %s3202_s8 = smov [#allocation2]  }
 0x41e   : > { %v2625_v30 = vsel %vm2082_vm3, %v2624_v61, %v2623_v13  ;;  %v2532_v52 = vsel %vm2097_vm8, %v2531_v3, %v2530_v19  ;;  %v2564_v41 = vsel %vm2094_vm7, %v2563_v4, %v2562_v14  ;;  %v2565_v8 = vrot.slane %v4691_v57, 6 }
 0x41f   : > { %v2627_v35 = vsel %vm2085_vm4, %v2626_v51, %v2625_v30  ;;  %v2630_v29 = vrot.slane %v4640_v39, 2  ;;  %v2099_v25 = vrot.slane %v4513_v45, 7  ;;  %v2101_v48 = vrot.slane %v4572_v16, 6 }
 0x420   : > { %v2629_v47 = vsel %vm2088_vm5, %v2628_v58, %v2627_v35  ;;  %v2566_v40 = vsel %vm2097_vm8, %v2565_v8, %v2564_v41  ;;  %v2105_v26 = vrot.slane %v4620_v42, 4  ;;  %v2103_v15 = vrot.slane %v4562_v11, 5 }
 0x421   : > { %2535 = vrot.lane.b32.xlu1 %v2532_v52, %s3199_s9  ;;  %v2631_v55 = vsel %vm2091_vm6, %v2630_v29, %v2629_v47  ;;  %v2100_v23 = vsel %vm2079_vm2, %v2099_v25, %v4522_v9  ;;  %v2109_v39 = vrot.slane %v4673_v59, 2  ;;  %v2107_v16 = vrot.slane %v4610_v63, 3  ;;  %s3124_s9 = sshll.u32 %s3202_s8, 4  ;;  %s3125_s9 = int_to_ptr.vmem [resolvable:$false] %s3124_s9 }
 0x422   : > { %v2633_v18 = vsel %vm2094_vm7, %v2632_v32, %v2631_v55  ;;  %v2102_v45 = vsel %vm2082_vm3, %v2101_v48, %v2100_v23  ;;  %v2111_v11 = vrot.slane %v4661_v53, 1  ;;  %v2087_v46 = vrot.slane %v4421_v31, 4  ;;  %p3127_p0 = scmp.lt.s32.totalorder %s5003_s22, %s3125_s9 }
 0x423   : > { %v2634_v22 = vsel %vm2097_vm8, %v4691_v57, %v2633_v18  ;;  %v2104_v10 = vsel %vm2085_vm4, %v2103_v15, %v2102_v45  ;;  %v2093_v12 = vrot.slane %v4480_v20, 2  ;;  %v2090_v49 = vrot.slane %v4404_v43, 3 }
 0x424   : > { %v2106_v42 = vsel %vm2088_vm5, %v2105_v26, %v2104_v10  ;;  %v2089_v53 = vsel %vm2088_vm5, %v2087_v46, %v4328_v27  ;;  %v2096_v2 = vrot.slane %v4468_v54, 1  ;;  %vm2664_vm2 = vcmask 654336  }
 0x425   : > { %2569 = vrot.lane.b32.xlu1 %v2566_v40, %s3200_s14  ;;  %v2108_v24 = vsel %vm2091_vm6, %v2107_v16, %v2106_v42  ;;  %v2092_v38 = vsel %vm2091_vm6, %v2090_v49, %v2089_v53  ;;  %vm2667_vm3 = vcmask 719872   ;;  %vm2670_vm4 = vcmask 785408   ;;  %s3126_s14 = scalar_lea.vmem %s3125_s9, 512 }
 0x426   : > { %v2110_v9 = vsel %vm2094_vm7, %v2109_v39, %v2108_v24  ;;  %v2095_v34 = vsel %vm2094_vm7, %v2093_v12, %v2092_v38  ;;  %vm2673_vm5 = vcmask 850944   ;;  %vm2676_vm6 = vcmask 916480   ;;  %p3128_p1 = scmp.lt.s32.totalorder %s3126_s14, %s3120_s28 }
 0x427   : > { %v4955_v59 = vsel %vm2097_vm8, %v2111_v11, %v2110_v9  ;;  %v2098_v31 = vsel %vm2097_vm8, %v2096_v2, %v2095_v34  ;;  %vm2679_vm7 = vcmask 982016  }
 0x428   : > { %p3129_p2 = por %p3128_p1, %p3127_p0 }
 0x429   : > { %2637 = vrot.lane.b32.xlu1 %v2634_v22, %s3201_s15 }
 0x42a   : > { %p3130_p3 = pnand %p3129_p2, %p3123_p13 }
 0x43d   : > { %v2314_v17 = vpop.permute.xlu0 %2313 }
 0x441   : > { %v2144_v33 = vpop.permute.xlu0 %2143 }
 0x442   : > { %v2641_v50 = vsel %vm398_vm1, %v2098_v31, %v2144_v33 }
 0x445   : > { %v2178_v57 = vpop.permute.xlu0 %2177 }
 0x446   : > { %v2643_v20 = vsel %vm1308_vm11, %v2641_v50, %v2178_v57 }
 0x449   : > { %v2212_v21 = vpop.permute.xlu0 %2211 }
 0x44a   : > { %v2645_v43 = vsel %vm1374_vm13, %v2643_v20, %v2212_v21 }
 0x44d   : > { %v2246_v63 = vpop.permute.xlu0 %2245 }
 0x44e   : > { %v2647_v6 = vsel %vm1440_vm15, %v2645_v43, %v2246_v63 }
 0x451   : > { %v2280_v7 = vpop.permute.xlu0 %2279 }
 0x452   : > { %v2650_v44 = vsel %vm2649_vm9, %v2647_v6, %v2280_v7 }
 0x453   : > { %v2653_v61 = vsel %vm2652_vm10, %v2650_v44, %v2314_v17 }
 0x455   : > { %v2348_v0 = vpop.permute.xlu0 %2347 }
 0x456   : > { %v2656_v19 = vsel %vm2655_vm12, %v2653_v61, %v2348_v0 }
 0x459   : > { %v2602_v28 = vpop.permute.xlu0 %2601 }
 0x45d   : > { %v2398_v36 = vpop.permute.xlu0 %2397 }
 0x45e   : > { %v2659_v37 = vsel %vm2658_vm14, %v2656_v19, %v2398_v36 }
 0x461   : > { %v2316_v1 = vpop.permute.xlu1 %2315  ;;  %v2432_v60 = vpop.permute.xlu0 %2431 }
 0x462   : > { %v2662_v58 = vsel %vm2661_vm0, %v2659_v37, %v2432_v60 }
 0x465   : > { %v2146_v62 = vpop.permute.xlu1 %2145  ;;  %v2466_v27 = vpop.permute.xlu0 %2465 }
 0x466   : > { %v2665_v13 = vsel %vm2664_vm2, %v2662_v58, %v2466_v27  ;;  %v2642_v55 = vsel %vm398_vm1, %v4955_v59, %v2146_v62 }
 0x469   : > { %v2180_v56 = vpop.permute.xlu1 %2179 }
 0x46a   : > { %v2500_v54 = vpop.permute.xlu0 %2499  ;;  %v2644_v48 = vsel %vm1308_vm11, %v2642_v55, %v2180_v56 }
 0x46b   : > { %v2668_v51 = vsel %vm2667_vm3, %v2665_v13, %v2500_v54 }
 0x46d   : > { %v2214_v5 = vpop.permute.xlu1 %2213 }
 0x46e   : > { %v2534_v4 = vpop.permute.xlu0 %2533  ;;  %v2646_v26 = vsel %vm1374_vm13, %v2644_v48, %v2214_v5 }
 0x46f   : > { %v2671_v30 = vsel %vm2670_vm4, %v2668_v51, %v2534_v4 }
 0x471   : > { %v2248_v3 = vpop.permute.xlu1 %2247 }
 0x472   : > { %v2648_v15 = vsel %vm1440_vm15, %v2646_v26, %v2248_v3 }
 0x473   : > { %v2568_v52 = vpop.permute.xlu0 %2567 }
 0x474   : > { %v2674_v14 = vsel %vm2673_vm5, %v2671_v30, %v2568_v52 }
 0x475   : > { %v2282_v35 = vpop.permute.xlu1 %2281  ;;  %v2677_v47 = vsel %vm2676_vm6, %v2674_v14, %v2602_v28 }
 0x476   : > { %v2651_v23 = vsel %vm2649_vm9, %v2648_v15, %v2282_v35 }
 0x477   : > { %v2636_v41 = vpop.permute.xlu0 %2635  ;;  %v2654_v45 = vsel %vm2652_vm10, %v2651_v23, %v2316_v1 }
 0x478   : > { %v2680_v32 = vsel %vm2679_vm7, %v2677_v47, %v2636_v41 }
 0x479   : > { %2682 = vst [vmem:[%s4984_s19] sm:$0xff] %v2680_v32 }
 0x47a   : > { %v2350_v8 = vpop.permute.xlu1 %2349 }
 0x47b   : > { %v2657_v22 = vsel %vm2655_vm12, %v2654_v45, %v2350_v8 }
 0x47f   : > { %v2604_v29 = vpop.permute.xlu1 %2603 }
 0x483   : > { %v2400_v25 = vpop.permute.xlu1 %2399 }
 0x484   : > { %v2660_v16 = vsel %vm2658_vm14, %v2657_v22, %v2400_v25 }
 0x487   : > { %v2434_v40 = vpop.permute.xlu1 %2433 }
 0x488   : > { %v2663_v42 = vsel %vm2661_vm0, %v2660_v16, %v2434_v40 }
 0x48b   : > { %v2468_v18 = vpop.permute.xlu1 %2467 }
 0x48c   : > { %v2666_v11 = vsel %vm2664_vm2, %v2663_v42, %v2468_v18 }
 0x48f   : > { %v2502_v39 = vpop.permute.xlu1 %2501 }
 0x490   : > { %v2669_v24 = vsel %vm2667_vm3, %v2666_v11, %v2502_v39 }
 0x493   : > { %v2536_v10 = vpop.permute.xlu1 %2535 }
 0x494   : > { %v2672_v9 = vsel %vm2670_vm4, %v2669_v24, %v2536_v10 }
 0x497   : > { %v2570_v59 = vpop.permute.xlu1 %2569 }
 0x498   : > { %v2675_v17 = vsel %vm2673_vm5, %v2672_v9, %v2570_v59 }
 0x499   : > { %v2678_v57 = vsel %vm2676_vm6, %v2675_v17, %v2604_v29 }
 0x49b   : > { %v2638_v33 = vpop.permute.xlu1 %2637 }
 0x49c   : > { %v2681_v21 = vsel %vm2679_vm7, %v2678_v57, %v2638_v33 }
 0x49d   : > { %2683 = vst [vmem:[%s4984_s19 + $0x8] sm:$0xff] %v2681_v21 }
 0x49e   : > { %3133 = shalt.err (!%p3130_p3)
}
 0x49f   : > { %s3134_s15 = scalar_lea.hbm %s5009_s29, 256  ;;  %s3138_s19 = scalar_lea.hbm %s5063_s7, 512 }
 0x4a0   : > { %p3135_p4 = scmp.ne.s32.totalorder %s5009_s29, %s3134_s15  ;;  %p3139_p9 = scmp.lt.s32.totalorder %s5009_s29, %s5063_s7 }
 0x4a1   : > { %p3140_p10 = scmp.lt.s32.totalorder %s3138_s19, %s3134_s15 }
 0x4a2   : > { %p3136_p7 = pnand %p3135_p4, %p3282_p5 }
 0x4a3   : > { %p3141_p11 = por %p3140_p10, %p3139_p9 }
 0x4a4   : > { %p3137_p8 = pneg %p3136_p7 }
 0x4a6   : > { %p3142_p12 = pnand %p3141_p11, %p3137_p8 }
 0x4a8   : > { %3145 = shalt.err (!%p3142_p12)
}
 0x4a9   : > { %s3203_s20 = smov 128  }
 0x4aa   : > { %3009 = dma.vmem_to_hbm [thread:$0]  (%p3282_p5), %s5003_s22, 256, %s5009_s29, %s5015_s13, %s3203_s20, %s3203_s20, %s3184_s21  }
 0x4ab PF: > { %p3015_p13 = scmp.ge.s32.totalorder %s3180_s27, 2  ;;  %s2713_s28 = sand.u32 1, %s3168_s24  }
 0x4ac   : > { %s2714_s8 = scalar_lea.sflag [#allocation3], %s2713_s28 }
 0x4ad   : > { %p3012_p0 = pnand %p3015_p13, %p3286_p6 }
 0x4af   : > { %p3013_p1 = pneg %p3012_p0 }
 0x4b1   : > { %3163 = dma.done.wait (%p3013_p1), %s2714_s8, 256  }
 0x4b2   : > { %3165 = vsyncadd (%p3013_p1), %s2714_s8, 4294967040  ;;  %p17_p2 = scmp.ge.s32.totalorder %s3269_s30, 4   ;;  %s5117_s24 = smov %s3172_s25 }
 0x4b3   : > { %s5118_s25 = smov %s3176_s26  ;;  %s5119_s26 = smov %s3280_s10 }
 0x4b4   : > { %s5120_s27 = smov %s3269_s30  ;;  %19 = sbr.rel (!%p17_p2) target bundleno = 3 (0x3), region = 83 }
 0x4b9   :  { %2719 = vsyncpa [#allocation3], 1 }
 0x4ba   :  { %2721 = vsyncpa [#allocation3 + $0x1], 1 }

</bundles_post_ra>
